<compile_context>
chip_gen: v5e
topology: v5e:2x2
jax: 0.10.0
libtpu: 0.0.40
codegen_flags: <defaults>
</compile_context>

<pallas_src>
import functools
import math

import jax
import jax.numpy as jnp
from jax.experimental import pallas as pl
from jax.experimental.pallas import tpu as pltpu


# ----------------------------------------------------------------------------
# Pallas kernel: one (cloud b, point-chunk k) step of the point encoder,
# fully in the transposed (channel/feature on sublanes, points on lanes) layout
#   x    = pc[b, :, k*Nt:(k+1)*Nt]                       [6, Nt]   bf16
#   h    = gelu(sum_c w1t[:, c] (x) x[c, :] + b1)        [H, Nt]   f32 (VPU)
#   y    = W2_T @ h                                      [D, Nt]   f32 (MXU)
#   out  = running max over point chunks                 [1, D]    (b2 outside)
# ----------------------------------------------------------------------------
def _point_encoder_kernel(pc_ref, w1t_ref, b1_ref, w2t_ref, out_ref, *,
                          n_valid, needs_mask):
    k = pl.program_id(1)

    # Output block is resident across the point-chunk axis -> use it as the
    # running-max accumulator.  Init to -inf on the first chunk.
    @pl.when(k == 0)
    def _init():
        out_ref[...] = jnp.full_like(out_ref, -jnp.inf)

    c, nt = pc_ref.shape                        # (6, Nt), lane-dense
    x = pc_ref[...].astype(jnp.float32)         # [6, Nt]
    w1t = w1t_ref[...]                          # [H, 6]  f32

    # Layer 1 off the MXU: 6 broadcast multiply-adds (outer-product accumulate)
    # on the VPU instead of a K=6 matmul padded to a full 128-wide K tile.
    h = w1t[:, 0:1] * x[0:1, :]                 # [H, Nt]
    for ci in range(1, c):
        h = h + w1t[:, ci:ci + 1] * x[ci:ci + 1, :]
    h = h + b1_ref[...]                         # [H, 1] broadcast over lanes
    # NOTE: tanh-approx GELU (PyTorch nn.GELU default is exact erf); the
    # encoder here is synthetic so exact parity is not required.  Kept in f32
    # so it also runs on v5e (no bf16 VPU/EUP there).
    h = jax.nn.gelu(h)

    # Layer 2 on the MXU, transposed layout stays lane-dense end to end.
    y = jnp.dot(w2t_ref[...], h.astype(w2t_ref.dtype),
                preferred_element_type=jnp.float32)         # [D, Nt]

    if needs_mask:
        # Padded points (lanes beyond the true point count) must not win the max.
        lane = jax.lax.broadcasted_iota(jnp.int32, y.shape, 1)
        y = jnp.where(k * nt + lane < n_valid, y, -jnp.inf)

    pooled = jnp.max(y, axis=1)                 # [D] (cross-lane reduce, XLU)
    out_ref[...] = jnp.maximum(out_ref[...], pooled.reshape(1, -1))


def _choose_point_tile(n, cap=4096):
    """Largest lane-multiple tile <= cap with small padding waste."""
    lane = 128
    n128 = ((n + lane - 1) // lane) * lane
    if n128 <= cap:
        return n128
    tile = cap
    best = None
    while tile >= lane:
        padded = pl.cdiv(n, tile) * tile
        waste = padded - n
        if best is None or waste < best[1]:
            best = (tile, waste)
        if waste * 8 <= n:        # accept the largest tile with <=12.5% padding
            return tile
        tile //= 2
    return best[0]


def encode_pc_pallas(pc, w1, b1, w2, b2, *, point_tile=None):
    """pc: [B, N, 6] float32 -> pc_embed: [B, D] float32."""
    B, N, C = pc.shape
    assert C == 6, "expect xyz(3) + color(3)"
    H = w1.shape[1]
    D = w2.shape[1]

    if point_tile is None:
        point_tile = _choose_point_tile(N)
    assert point_tile % 128 == 0
    n_pad = pl.cdiv(N, point_tile) * point_tile

    # Channel-major, lane-dense point axis; bf16 storage halves HBM traffic.
    pc_cm = jnp.swapaxes(pc, 1, 2).astype(jnp.bfloat16)      # [B, 6, N]
    if n_pad != N:
        pc_cm = jnp.pad(pc_cm, ((0, 0), (0, 0), (0, n_pad - N)))

    w1t = jnp.asarray(w1, jnp.float32).T                      # [H, 6]  (VPU layer)
    b1c = jnp.asarray(b1, jnp.float32).reshape(H, 1)          # [H, 1]
    w2t = jnp.asarray(w2, jnp.bfloat16).T                     # [D, H]  (MXU layer)

    grid = (B, n_pad // point_tile)
    kernel = functools.partial(_point_encoder_kernel,
                               n_valid=N, needs_mask=(n_pad != N))

    cost = pl.CostEstimate(
        flops=2 * B * n_pad * (C * H + H * D),
        transcendentals=B * n_pad * H,
        bytes_accessed=(pc_cm.size * 2 + w1t.size * 4 + b1c.size * 4
                        + w2t.size * 2 + B * D * 4),
    )

    out = pl.pallas_call(
        kernel,
        out_shape=jax.ShapeDtypeStruct((B, 1, D), jnp.float32),
        grid_spec=pltpu.PrefetchScalarGridSpec(
            num_scalar_prefetch=0,
            grid=grid,
            in_specs=[
                # pc: one cloud per b step, Nt points per k step, lanes = points
                pl.BlockSpec((pl.Squeezed(), 6, point_tile),
                             lambda b, k: (b, 0, k)),
                pl.BlockSpec((H, 6), lambda b, k: (0, 0)),    # W1^T (VPU layer)
                pl.BlockSpec((H, 1), lambda b, k: (0, 0)),    # b1 column
                pl.BlockSpec((D, H), lambda b, k: (0, 0)),    # W2^T (MXU layer)
            ],
            out_specs=pl.BlockSpec((pl.Squeezed(), 1, D),
                                   lambda b, k: (b, 0, 0)),   # lane-dense (1, D)
        ),
        compiler_params=pltpu.CompilerParams(
            dimension_semantics=("parallel", "arbitrary"),
            vmem_limit_bytes=48 * 1024 * 1024,   # fits v7x's 64 MiB physical VMEM
        ),
        cost_estimate=cost,
    )(pc_cm, w1t, b1c, w2t)

    # b2 is constant over the point axis: max(h@W2 + b2) == max(h@W2) + b2.
    return out.reshape(B, D) + jnp.asarray(b2, jnp.float32).reshape(1, D)


def _encode_pc_ref(pc, w1, b1, w2, b2):
    """Pure-JAX f32 reference of the synthetic point encoder."""
    h = jax.nn.gelu(jnp.einsum('bnc,ch->bnh', pc, w1) + b1.reshape(1, 1, -1))
    y = jnp.einsum('bnh,hd->bnd', h, w2)
    return jnp.max(y, axis=1) + b2.reshape(1, -1)


# ----------------------------------------------------------------------------
# Uni3D wrapper
# ----------------------------------------------------------------------------
class Uni3DPallas:
    def __init__(self, key, hidden=128, embed_dim=128):
        # logit_scale = log(1 / 0.07), like nn.Parameter(torch.ones([]) * np.log(1/0.07))
        self.logit_scale = jnp.asarray(math.log(1.0 / 0.07), dtype=jnp.float32)

        k1, k2 = jax.random.split(key, 2)
        # Fused first-layer weight: rows 0:3 act on xyz, rows 3:6 on color,
        # so the point cloud is consumed unsliced (channel dim 6) in one pass.
        self.w1 = jax.random.normal(k1, (6, hidden), dtype=jnp.float32) * 0.1
        self.b1 = jnp.zeros((1, hidden), dtype=jnp.float32)
        self.w2 = jax.random.normal(k2, (hidden, embed_dim), dtype=jnp.float32) * 0.1
        self.b2 = jnp.zeros((1, embed_dim), dtype=jnp.float32)

    def encode_pc(self, pc):
        return encode_pc_pallas(pc, self.w1, self.b1, self.w2, self.b2)

    def __call__(self, pc, text, image):
        text_embed_all = text          # pass-through
        image_embed = image            # pass-through
        pc_embed = self.encode_pc(pc)
        return {
            'text_embed': text_embed_all,
            'pc_embed': pc_embed,
            'image_embed': image_embed,
            'logit_scale': jnp.exp(self.logit_scale),
        }


if __name__ == "__main__":
    key = jax.random.PRNGKey(0)
    k_pc, k_text, k_img, k_model = jax.random.split(key, 4)

    B, N, C = 2, 16, 6          # batch, points, xyz+rgb
    HIDDEN, EMBED = 128, 128    # lane-dense hidden / embedding widths

    pc = jax.random.normal(k_pc, (B, N, C), dtype=jnp.float32)
    text = jax.random.normal(k_text, (B, EMBED), dtype=jnp.float32)
    image = jax.random.normal(k_img, (B, EMBED), dtype=jnp.float32)

    model = Uni3DPallas(k_model, hidden=HIDDEN, embed_dim=EMBED)
    out = model(pc, text, image)

    jax.block_until_ready(out['pc_embed'])
    jax.block_until_ready(out['logit_scale'])

    assert out['pc_embed'].shape == (B, EMBED)
    assert out['text_embed'].shape == (B, EMBED)
    assert out['image_embed'].shape == (B, EMBED)
    assert out['logit_scale'].shape == ()
    assert bool(jnp.all(jnp.isfinite(out['pc_embed'])))

    # Loose-tolerance check vs a pure-JAX f32 reference (kernel stores pc/W2
    # in bf16, so only expect ~1e-2-level agreement).
    ref = _encode_pc_ref(pc, model.w1, model.b1, model.w2, model.b2)
    assert bool(jnp.allclose(out['pc_embed'], ref, atol=5e-2, rtol=5e-2))

    print("KERNEL_OK")
</pallas_src>

<mosaic_0001>
module attributes {stable_mosaic.version = 11 : i64} {
  func.func @_point_encoder_kernel(%arg0: i32, %arg1: i32, %arg2: memref<1x6x128xbf16, #tpu.memory_space<vmem>>, %arg3: memref<128x6xf32, #tpu.memory_space<vmem>>, %arg4: memref<128x1xf32, #tpu.memory_space<vmem>>, %arg5: memref<128x128xbf16, #tpu.memory_space<vmem>>, %arg6: memref<1x1x128xf32, #tpu.memory_space<vmem>>) attributes {dimension_semantics = [#tpu.dimension_semantics<parallel>, #tpu.dimension_semantics<arbitrary>], iteration_bounds = array<i64: 2, 1>, scalar_prefetch = 0 : i64, scratch_operands = 0 : i64, tpu.core_type = #tpu.core_type<tc>, window_params = [{transform_indices = @transform_0, window_bounds = array<i64: 1, 6, 128>}, {pipeline_mode = #tpu.pipeline_mode<synchronous>, transform_indices = @transform_1, window_bounds = array<i64: 128, 6>}, {pipeline_mode = #tpu.pipeline_mode<synchronous>, transform_indices = @transform_2, window_bounds = array<i64: 128, 1>}, {pipeline_mode = #tpu.pipeline_mode<synchronous>, transform_indices = @transform_3, window_bounds = array<i64: 128, 128>}, {transform_indices = @transform_4, window_bounds = array<i64: 1, 1, 128>}]} {
    %c0_i32 = arith.constant 0 : i32
    %0 = arith.cmpi eq, %arg1, %c0_i32 : i32
    %1 = arith.extui %0 : i1 to i32
    %c0_i32_0 = arith.constant 0 : i32
    %2 = arith.cmpi ne, %1, %c0_i32_0 : i32
    scf.if %2 {
      %cst_21 = arith.constant 0xFF800000 : f32
      %77 = vector.broadcast %cst_21 : f32 to vector<1x128xf32>
      %c0_22 = arith.constant 0 : index
      %c0_23 = arith.constant 0 : index
      %c0_24 = arith.constant 0 : index
      %78 = vector.load %arg6[%c0_22, %c0_23, %c0_24] : memref<1x1x128xf32, #tpu.memory_space<vmem>>, vector<1x1x128xf32>
      %79 = vector.shape_cast %78 : vector<1x1x128xf32> to vector<1x128xf32>
      %80 = vector.shape_cast %77 : vector<1x128xf32> to vector<1x1x128xf32>
      tpu.vector_store %arg6[%c0_22, %c0_23, %c0_24], %80 {strides = array<i32>} : memref<1x1x128xf32, #tpu.memory_space<vmem>>, vector<1x1x128xf32>,
    } else {
    }
    %c0 = arith.constant 0 : index
    %c0_1 = arith.constant 0 : index
    %c0_2 = arith.constant 0 : index
    %3 = vector.load %arg2[%c0, %c0_1, %c0_2] : memref<1x6x128xbf16, #tpu.memory_space<vmem>>, vector<1x6x128xbf16>
    %4 = vector.shape_cast %3 : vector<1x6x128xbf16> to vector<6x128xbf16>
    %5 = arith.extf %4 : vector<6x128xbf16> to vector<6x128xf32>
    %c0_3 = arith.constant 0 : index
    %c0_4 = arith.constant 0 : index
    %6 = vector.load %arg3[%c0_3, %c0_4] : memref<128x6xf32, #tpu.memory_space<vmem>>, vector<128x6xf32>
    %7 = vector.extract_strided_slice %6 {offsets = [0, 0], sizes = [128, 1], strides = [1, 1]} : vector<128x6xf32> to vector<128x1xf32>
    %8 = vector.extract_strided_slice %5 {offsets = [0, 0], sizes = [1, 128], strides = [1, 1]} : vector<6x128xf32> to vector<1x128xf32>
    %9 = vector.broadcast %7 : vector<128x1xf32> to vector<128x128xf32>
    %10 = vector.broadcast %8 : vector<1x128xf32> to vector<128x128xf32>
    %11 = arith.mulf %9, %10 : vector<128x128xf32>
    %12 = vector.extract_strided_slice %6 {offsets = [0, 1], sizes = [128, 1], strides = [1, 1]} : vector<128x6xf32> to vector<128x1xf32>
    %13 = vector.extract_strided_slice %5 {offsets = [1, 0], sizes = [1, 128], strides = [1, 1]} : vector<6x128xf32> to vector<1x128xf32>
    %14 = vector.broadcast %12 : vector<128x1xf32> to vector<128x128xf32>
    %15 = vector.broadcast %13 : vector<1x128xf32> to vector<128x128xf32>
    %16 = arith.mulf %14, %15 : vector<128x128xf32>
    %17 = arith.addf %11, %16 : vector<128x128xf32>
    %18 = vector.extract_strided_slice %6 {offsets = [0, 2], sizes = [128, 1], strides = [1, 1]} : vector<128x6xf32> to vector<128x1xf32>
    %19 = vector.extract_strided_slice %5 {offsets = [2, 0], sizes = [1, 128], strides = [1, 1]} : vector<6x128xf32> to vector<1x128xf32>
    %20 = vector.broadcast %18 : vector<128x1xf32> to vector<128x128xf32>
    %21 = vector.broadcast %19 : vector<1x128xf32> to vector<128x128xf32>
    %22 = arith.mulf %20, %21 : vector<128x128xf32>
    %23 = arith.addf %17, %22 : vector<128x128xf32>
    %24 = vector.extract_strided_slice %6 {offsets = [0, 3], sizes = [128, 1], strides = [1, 1]} : vector<128x6xf32> to vector<128x1xf32>
    %25 = vector.extract_strided_slice %5 {offsets = [3, 0], sizes = [1, 128], strides = [1, 1]} : vector<6x128xf32> to vector<1x128xf32>
    %26 = vector.broadcast %24 : vector<128x1xf32> to vector<128x128xf32>
    %27 = vector.broadcast %25 : vector<1x128xf32> to vector<128x128xf32>
    %28 = arith.mulf %26, %27 : vector<128x128xf32>
    %29 = arith.addf %23, %28 : vector<128x128xf32>
    %30 = vector.extract_strided_slice %6 {offsets = [0, 4], sizes = [128, 1], strides = [1, 1]} : vector<128x6xf32> to vector<128x1xf32>
    %31 = vector.extract_strided_slice %5 {offsets = [4, 0], sizes = [1, 128], strides = [1, 1]} : vector<6x128xf32> to vector<1x128xf32>
    %32 = vector.broadcast %30 : vector<128x1xf32> to vector<128x128xf32>
    %33 = vector.broadcast %31 : vector<1x128xf32> to vector<128x128xf32>
    %34 = arith.mulf %32, %33 : vector<128x128xf32>
    %35 = arith.addf %29, %34 : vector<128x128xf32>
    %36 = vector.extract_strided_slice %6 {offsets = [0, 5], sizes = [128, 1], strides = [1, 1]} : vector<128x6xf32> to vector<128x1xf32>
    %37 = vector.extract_strided_slice %5 {offsets = [5, 0], sizes = [1, 128], strides = [1, 1]} : vector<6x128xf32> to vector<1x128xf32>
    %38 = vector.broadcast %36 : vector<128x1xf32> to vector<128x128xf32>
    %39 = vector.broadcast %37 : vector<1x128xf32> to vector<128x128xf32>
    %40 = arith.mulf %38, %39 : vector<128x128xf32>
    %41 = arith.addf %35, %40 : vector<128x128xf32>
    %c0_5 = arith.constant 0 : index
    %c0_6 = arith.constant 0 : index
    %42 = vector.load %arg4[%c0_5, %c0_6] : memref<128x1xf32, #tpu.memory_space<vmem>>, vector<128x1xf32>
    %43 = vector.broadcast %42 : vector<128x1xf32> to vector<128x128xf32>
    %44 = arith.addf %41, %43 : vector<128x128xf32>
    %45 = arith.mulf %44, %44 : vector<128x128xf32>
    %46 = arith.mulf %44, %45 : vector<128x128xf32>
    %cst = arith.constant 4.471500e-02 : f32
    %47 = vector.broadcast %cst : f32 to vector<128x128xf32>
    %48 = arith.mulf %47, %46 : vector<128x128xf32>
    %49 = arith.addf %44, %48 : vector<128x128xf32>
    %cst_7 = arith.constant 0.797884583 : f32
    %50 = vector.broadcast %cst_7 : f32 to vector<128x128xf32>
    %51 = arith.mulf %50, %49 : vector<128x128xf32>
    %52 = math.tanh %51 : vector<128x128xf32>
    %cst_8 = arith.constant 1.000000e+00 : f32
    %53 = vector.broadcast %cst_8 : f32 to vector<128x128xf32>
    %54 = arith.addf %53, %52 : vector<128x128xf32>
    %cst_9 = arith.constant 5.000000e-01 : f32
    %55 = vector.broadcast %cst_9 : f32 to vector<128x128xf32>
    %56 = arith.mulf %55, %54 : vector<128x128xf32>
    %57 = arith.mulf %44, %56 : vector<128x128xf32>
    %c0_10 = arith.constant 0 : index
    %c0_11 = arith.constant 0 : index
    %58 = vector.load %arg5[%c0_10, %c0_11] : memref<128x128xbf16, #tpu.memory_space<vmem>>, vector<128x128xbf16>
    %59 = arith.truncf %57 : vector<128x128xf32> to vector<128x128xbf16>
    %cst_12 = arith.constant dense<0.000000e+00> : vector<128x128xf32>
    %60 = tpu.matmul %58, %59, %cst_12 {dimension_numbers = #tpu.dot_dimension_numbers<[1], [0], [0], [1], [0, 0, 1, 1], [], []>} : vector<128x128xbf16>, vector<128x128xbf16>, vector<128x128xf32> -> vector<128x128xf32>
    %61 = tpu.iota {dimensions = array<i32: 1>} : vector<128x128xi32>
    %c128_i32 = arith.constant 128 : i32
    %62 = arith.muli %arg1, %c128_i32 : i32
    %63 = vector.broadcast %62 : i32 to vector<128x128xi32>
    %64 = arith.addi %63, %61 : vector<128x128xi32>
    %c16_i32 = arith.constant 16 : i32
    %65 = vector.broadcast %c16_i32 : i32 to vector<128x128xi32>
    %66 = arith.cmpi slt, %64, %65 : vector<128x128xi32>
    %cst_13 = arith.constant 0xFF800000 : f32
    %67 = vector.broadcast %cst_13 : f32 to vector<128x128xf32>
    %68 = arith.select %66, %60, %67 : vector<128x128xi1>, vector<128x128xf32>
    %cst_14 = arith.constant dense<0xFF800000> : vector<128xf32>
    %69 = vector.multi_reduction <maximumf>, %68, %cst_14 [1] : vector<128x128xf32> to vector<128xf32>
    %c0_15 = arith.constant 0 : index
    %c0_16 = arith.constant 0 : index
    %c0_17 = arith.constant 0 : index
    %70 = vector.load %arg6[%c0_15, %c0_16, %c0_17] : memref<1x1x128xf32, #tpu.memory_space<vmem>>, vector<1x1x128xf32>
    %71 = vector.shape_cast %70 : vector<1x1x128xf32> to vector<1x128xf32>
    %72 = vector.shape_cast %69 : vector<128xf32> to vector<1x128xf32>
    %73 = arith.maximumf %71, %72 : vector<1x128xf32>
    %c0_18 = arith.constant 0 : index
    %c0_19 = arith.constant 0 : index
    %c0_20 = arith.constant 0 : index
    %74 = vector.load %arg6[%c0_18, %c0_19, %c0_20] : memref<1x1x128xf32, #tpu.memory_space<vmem>>, vector<1x1x128xf32>
    %75 = vector.shape_cast %74 : vector<1x1x128xf32> to vector<1x128xf32>
    %76 = vector.shape_cast %73 : vector<1x128xf32> to vector<1x1x128xf32>
    tpu.vector_store %arg6[%c0_18, %c0_19, %c0_20], %76 {strides = array<i32>} : memref<1x1x128xf32, #tpu.memory_space<vmem>>, vector<1x1x128xf32>,
    return
  }
  func.func @transform_0(%arg0: i32, %arg1: i32) -> (i32, i32, i32) {
    %c0_i32 = arith.constant 0 : i32
    %c0_i32_0 = arith.constant 0 : i32
    return %arg0, %c0_i32, %arg1 : i32, i32, i32
  }
  func.func @transform_1(%arg0: i32, %arg1: i32) -> (i32, i32) {
    %c0_i32 = arith.constant 0 : i32
    %c0_i32_0 = arith.constant 0 : i32
    %c0_i32_1 = arith.constant 0 : i32
    return %c0_i32, %c0_i32_0 : i32, i32
  }
  func.func @transform_2(%arg0: i32, %arg1: i32) -> (i32, i32) {
    %c0_i32 = arith.constant 0 : i32
    %c0_i32_0 = arith.constant 0 : i32
    %c0_i32_1 = arith.constant 0 : i32
    return %c0_i32, %c0_i32_0 : i32, i32
  }
  func.func @transform_3(%arg0: i32, %arg1: i32) -> (i32, i32) {
    %c0_i32 = arith.constant 0 : i32
    %c0_i32_0 = arith.constant 0 : i32
    %c0_i32_1 = arith.constant 0 : i32
    return %c0_i32, %c0_i32_0 : i32, i32
  }
  func.func @transform_4(%arg0: i32, %arg1: i32) -> (i32, i32, i32) {
    %c0_i32 = arith.constant 0 : i32
    %c0_i32_0 = arith.constant 0 : i32
    %c0_i32_1 = arith.constant 0 : i32
    return %arg0, %c0_i32, %c0_i32_0 : i32, i32, i32
  }
}

</mosaic_0001>

<bundles_post_ra>
// kernel: tpu_custom_call.1
= control target key start
LH: loop header
LB: loop body
LE: loop exit
PB: predicated region body
PF: predicated region fallthrough
CT: control target
= control target key end

     0   :  { %9 = vsyncpa [#allocation3], 0  ;;  %s2842_s0 = inlined_call_operand.vmem [shape: bf16[2,6,128], index: 0, kind: input, shape index: {}]   ;;  %s2843_s1 = inlined_call_operand.vmem [shape: f32[128,6], index: 1, kind: input, shape index: {}]   ;;  %s2844_s2 = inlined_call_operand.vmem [shape: f32[128,1], index: 2, kind: input, shape index: {}]   ;;  %s2845_s3 = inlined_call_operand.vmem [shape: bf16[128,128], index: 3, kind: input, shape index: {}]   ;;  %s2846_s4 = inlined_call_operand.hbm [shape: f32[2,1,128], index: 4, kind: output, shape index: {}]  }
   0x1   :  { %11 = vsyncpa [#allocation3 + $0x1], 0  ;;  %s2067_s15 = smov 0   ;;  %s2069_s16 = smov 0  }
   0x2   :  { %s2071_s17 = smov 0   ;;  %s2073_s18 = smov 0  }
   0x3   :  { %s2075_s19 = smov 0   ;;  %s2077_s20 = smov 0  }
   0x4 LB: > { %s1738_s21 = sadd.s32 4294967295, %s2033_s20   ;;  %s1739_s22 = sadd.s32 4294967294, %s2033_s20   ;;  %s2033_s20 = sphi %s2077_s20, %s17_s20   ;;  %s2029_s19 = sphi %s2075_s19, %s2853_s19   ;;  %s2025_s18 = sphi %s2073_s18, %s2852_s18   ;;  %s2021_s17 = sphi %s2071_s17, %s2851_s17   ;;  %s2017_s16 = sphi %s2069_s16, %s2850_s16   ;;  %s2013_s15 = sphi %s2067_s15, %s2849_s15  }
   0x5   : > { %s29_s23 = sadd.s32 1, %s2029_s19  ;;  %s127_s24 = sadd.s32 1, %s2021_s17 }
   0x6   : > { %p31_p0 = scmp.ge.s32.totalorder %s29_s23, 2  ;;  %p137_p1 = scmp.ne.s32.totalorder %s2021_s17, %s2017_s16 }
   0x7   : > { %p138_p2 = scmp.eq.s32.totalorder %s1738_s21, 1  ;;  %p143_p3 = scmp.ne.s32.totalorder %s2017_s16, %s2013_s15 }
   0x8   : > { %s2855_s23 = smov (%p31_p0, %s29_s23), 0  ;;  %p144_p5 = scmp.eq.s32.totalorder %s1739_s22, 1 }
   0x9   : > { %p2107_p4 = por %p138_p2, %p137_p1  ;;  %s124_s26 = ssub.s32 %s2029_s19, %s2855_s23 }
   0xa   : > { %p1742_p6 = scmp.ge.s32.totalorder %s2033_s20, 1  ;;  %p125_p7 = scmp.eq.s32.totalorder %s124_s26, 0 }
   0xb   : > { %p2114_p8 = por %p144_p5, %p143_p3  ;;  %p181_p9 = scmp.lt.s32.totalorder %s2033_s20, 3 }
   0xc   : > { %s2120_s28 = scalar_select %p125_p7, %s2021_s17, %s127_s24  }
   0xd   : > { %p182_p10 = pnand %p1742_p6, %p181_p9 }
   0xe   : > { %p208_p11 = scmp.lt.s32.totalorder (!%p182_p10), %s2025_s18, 1  ;;  %s206_s8 = sand.u32 (!%p182_p10), 1, %s2017_s16  }
   0xf   : > { %185 = sbr.rel (%p182_p10) target bundleno = 1118 (0x45e), region = 36  ;;  %s2782_s9 = scalar_lea.vmem (!%p182_p10), [#allocation2], %s206_s8 }
  0x10   : > { %s1668_s12 = scalar_lea.hbm (!%p182_p10), %s2846_s4, %s2025_s18  ;;  %s1670_s13 = sshll.u32 (!%p182_p10), %s2782_s9, 4  ;;  %s1671_s13 = int_to_ptr.vmem [resolvable:$true] %s1670_s13 }
  0x11   : > { %s1672_s14 = sshll.u32 (!%p182_p10), %s1668_s12, 4  ;;  %s1660_s21 = scalar_lea.sflag (!%p182_p10), [#allocation3], %s206_s8  ;;  %s1673_s14 = int_to_ptr.hbm [resolvable:$true] %s1672_s14 }
  0x14   : > { %v2125_v0 = vld [vmem:[%s2843_s1 + $0x20] sm:$0xff]  ;;  %v2130_v1 = vld [vmem:[%s2843_s1 + $0x10] sm:$0xff]  ;;  %v2035_v3 = vmov 0   ;;  %v2146_v4 = vld [vmem:[%s2843_s1 + $0x28] sm:$0xff]  ;;  %v2036_v17 = vmov 1   ;;  %v2037_v18 = vmov 2  }
  0x15   : > { %v2135_v2 = vld [vmem:[%s2843_s1] sm:$0xff]  ;;  %1874 = vset.pattern.permute.xlu2 %v2035_v3  ;;  %1873 = vset.pattern.permute.xlu1 %v2035_v3  ;;  %v2151_v5 = vld [vmem:[%s2843_s1 + $0x18] sm:$0xff]  ;;  %v2156_v6 = vld [vmem:[%s2843_s1 + $0x8] sm:$0xff]  ;;  %s209_s29 = scalar_select %p208_p11, %s2025_s18, 1  ;;  %v2038_v29 = vmov 3   ;;  %v2039_v63 = vmov 5  }
  0x16   : > { %1872 = vset.pattern.permute.xlu0 %v2035_v3  ;;  %260 = vperm.xlu2 %1874, %v2125_v0   ;;  %v2164_v7 = vld [vmem:[%s2843_s1 + $0x40] sm:$0xff]  ;;  %v2169_v8 = vld [vmem:[%s2843_s1 + $0x38] sm:$0xff]  ;;  %v2174_v9 = vld [vmem:[%s2843_s1 + $0x30] sm:$0xff]  ;;  %vm1598_vm1 = vcmask 130112   ;;  %vm1602_vm2 = vcmask 195712   ;;  %vm1606_vm3 = vcmask 261312  }
  0x17   : > { %250 = vperm.xlu1 %1873, %v2130_v1   ;;  %240 = vperm.xlu0 %1872, %v2135_v2   ;;  %v2182_v10 = vld [vmem:[%s2843_s1 + $0x58] sm:$0xff]  ;;  %v2187_v11 = vld [vmem:[%s2843_s1 + $0x50] sm:$0xff]  ;;  %v2192_v12 = vld [vmem:[%s2843_s1 + $0x48] sm:$0xff]  ;;  %s1743_s30 = sshll.u32 %s209_s29, 2  ;;  %vm1610_vm4 = vcmask 326912   ;;  %vm1614_vm5 = vcmask 392512  }
  0x18   : > { %v2200_v13 = vld [vmem:[%s2843_s1 + $0x70] sm:$0xff]  ;;  %v2205_v14 = vld [vmem:[%s2843_s1 + $0x68] sm:$0xff]  ;;  %v2210_v15 = vld [vmem:[%s2843_s1 + $0x60] sm:$0xff]  ;;  %s214_s7 = scalar_lea.vmem %s2842_s0, %s1743_s30  ;;  %vm1618_vm6 = vcmask 458112   ;;  %vm1622_vm7 = vcmask 523712   ;;  %vm1626_vm8 = vcmask 589312  }
  0x19   : > { %v2218_v16 = vld [vmem:[%s2843_s1 + $0x78] sm:$0xff]  ;;  %v220_v25 = vld [vmem:[%s214_s7] sm:$0x7]  ;;  %vm1630_vm9 = vcmask 654912   ;;  %vm1634_vm10 = vcmask 720512   ;;  %vm1638_vm11 = vcmask 786112  }
  0x1a   : > { %v2271_v30 = vunpack.c.l.bf16 %v220_v25  ;;  %vm1642_vm12 = vcmask 851712   ;;  %vm1646_vm13 = vcmask 917312   ;;  %vm1650_vm14 = vcmask 982912   ;;  %s1969_s18 = sshra.s32 %s1673_s14, 4  ;;  %s1975_s29 = scalar_lea.hbm %s2846_s4, 2  ;;  %s1970_s18 = int_to_ptr.hbm [resolvable:$true] %s1969_s18 }
  0x1b   : > { %vm1654_vm15 = vcmask 1048512   ;;  %s1971_s22 = scalar_lea.hbm %s1970_s18, 1  ;;  %p1976_p1 = scmp.lt.s32.totalorder %s1970_s18, %s2846_s4 }
  0x1c   : > { %v2275_v31 = vperm.slane %v2271_v30, 0  ;;  %v2280_v34 = vperm.slane %v2271_v30, 1  ;;  %p1972_p12 = scmp.ne.s32.totalorder %s1970_s18, %s1971_s22  ;;  %p1977_p2 = scmp.lt.s32.totalorder %s1975_s29, %s1971_s22 }
  0x1e   : > { %265 = vperm.xlu2 %1874, %v2146_v4   ;;  %p1973_p13 = pnand %p1972_p12, %p2107_p4  ;;  %p1978_p3 = por %p1977_p2, %p1976_p1 }
  0x1f   : > { %255 = vperm.xlu1 %1873, %v2151_v5   ;;  %245 = vperm.xlu0 %1872, %v2156_v6  }
  0x20   : > { %p1974_p0 = pneg %p1973_p13 }
  0x22   : > { %p1979_p5 = pnand %p1978_p3, %p1974_p0 }
  0x26   : > { %280 = vperm.xlu2 %1874, %v2164_v7  }
  0x27   : > { %275 = vperm.xlu1 %1873, %v2169_v8   ;;  %270 = vperm.xlu0 %1872, %v2174_v9  }
  0x2e   : > { %295 = vperm.xlu2 %1874, %v2182_v10  }
  0x2f   : > { %290 = vperm.xlu1 %1873, %v2187_v11   ;;  %285 = vperm.xlu0 %1872, %v2192_v12  }
  0x36   : > { %310 = vperm.xlu2 %1874, %v2200_v13  }
  0x37   : > { %305 = vperm.xlu1 %1873, %v2205_v14   ;;  %300 = vperm.xlu0 %1872, %v2210_v15  }
  0x3e   : > { %1876 = vset.pattern.permute.xlu2 %v2036_v17 }
  0x3f   : > { %1875 = vset.pattern.permute.xlu1 %v2036_v17  ;;  %315 = vperm.xlu0 %1872, %v2218_v16  }
  0x40   : > { %340 = vperm.xlu2 %1876, %v2156_v6   ;;  %336 = vperm.xlu1 %1875, %v2135_v2  }
  0x47   : > { %1877 = vset.pattern.permute.xlu0 %v2036_v17 }
  0x48   : > { %352 = vperm.xlu2 %1876, %v2125_v0   ;;  %348 = vperm.xlu1 %1875, %v2151_v5  }
  0x49   : > { %344 = vperm.xlu0 %1877, %v2130_v1  }
  0x50   : > { %360 = vperm.xlu2 %1876, %v2174_v9   ;;  %356 = vperm.xlu1 %1875, %v2146_v4  }
  0x51   : > { %364 = vperm.xlu0 %1877, %v2169_v8  }
  0x58   : > { %372 = vperm.xlu2 %1876, %v2192_v12   ;;  %368 = vperm.xlu1 %1875, %v2164_v7  }
  0x59   : > { %376 = vperm.xlu0 %1877, %v2187_v11  }
  0x60   : > { %384 = vperm.xlu2 %1876, %v2210_v15   ;;  %380 = vperm.xlu1 %1875, %v2182_v10  }
  0x61   : > { %388 = vperm.xlu0 %1877, %v2205_v14  }
  0x68   : > { %396 = vperm.xlu2 %1876, %v2218_v16   ;;  %392 = vperm.xlu1 %1875, %v2200_v13  }
  0x69   : > { %1878 = vset.pattern.permute.xlu0 %v2037_v18 }
  0x6a   : > { %433 = vperm.xlu0 %1878, %v2135_v2  }
  0x70   : > { %1880 = vset.pattern.permute.xlu2 %v2037_v18  ;;  %1879 = vset.pattern.permute.xlu1 %v2037_v18  ;;  %v2238_v19 = vpop.permute.xlu2 %260 }
  0x71   : > { %441 = vperm.xlu2 %1880, %v2130_v1   ;;  %437 = vperm.xlu1 %1879, %v2156_v6  }
  0x72   : > { %453 = vperm.xlu0 %1878, %v2146_v4  }
  0x78   : > { %v2243_v20 = vpop.permute.xlu2 %265 }
  0x79   : > { %449 = vperm.xlu2 %1880, %v2125_v0   ;;  %445 = vperm.xlu1 %1879, %v2151_v5  }
  0x7a   : > { %465 = vperm.xlu0 %1878, %v2164_v7  }
  0x80   : > { %v2248_v21 = vpop.permute.xlu2 %280 }
  0x81   : > { %461 = vperm.xlu2 %1880, %v2169_v8   ;;  %457 = vperm.xlu1 %1879, %v2174_v9  }
  0x82   : > { %477 = vperm.xlu0 %1878, %v2182_v10  }
  0x88   : > { %v2255_v22 = vpop.permute.xlu2 %295 }
  0x89   : > { %v2257_v23 = vpop.permute.xlu1 %250  ;;  %473 = vperm.xlu2 %1880, %v2187_v11   ;;  %469 = vperm.xlu1 %1879, %v2192_v12   ;;  %v241_v24 = vpop.permute.xlu0 %240 }
  0x8a   : > { %489 = vperm.xlu0 %1878, %v2200_v13   ;;  %v319_v49 = vmul.f32 %v2275_v31, %v241_v24 }
  0x90   : > { %v2265_v26 = vpop.permute.xlu2 %310 }
  0x91   : > { %v2267_v27 = vpop.permute.xlu1 %255  ;;  %485 = vperm.xlu2 %1880, %v2205_v14   ;;  %481 = vperm.xlu1 %1879, %v2210_v15   ;;  %v246_v28 = vpop.permute.xlu0 %245 }
  0x92   : > { %1882 = vset.pattern.permute.xlu0 %v2038_v29  ;;  %v320_v32 = vmul.f32 %v2275_v31, %v246_v28 }
  0x93   : > { %534 = vperm.xlu0 %1882, %v2156_v6  }
  0x99   : > { %v276_v33 = vpop.permute.xlu1 %275  ;;  %1881 = vset.pattern.permute.xlu2 %v2038_v29  ;;  %493 = vperm.xlu1 %1879, %v2218_v16   ;;  %v271_v35 = vpop.permute.xlu0 %270 }
  0x9a   : > { %v341_v36 = vpop.permute.xlu2 %340  ;;  %530 = vperm.xlu2 %1881, %v2135_v2   ;;  %v325_v43 = vmul.f32 %v2275_v31, %v271_v35 }
  0x9b   : > { %v401_v37 = vmul.f32 %v2280_v34, %v341_v36  ;;  %554 = vperm.xlu0 %1882, %v2174_v9  }
  0x9d   : > { %v2285_v38 = vadd.f32 %v401_v37, %v320_v32  ;;  %v326_v37 = vmul.f32 %v2275_v31, %v276_v33  ;;  %v327_v33 = vmul.f32 %v2275_v31, %v2248_v21 }
  0xa1   : > { %v2287_v39 = vpop.permute.xlu1 %290  ;;  %1883 = vset.pattern.permute.xlu1 %v2038_v29  ;;  %v286_v40 = vpop.permute.xlu0 %285 }
  0xa2   : > { %v353_v41 = vpop.permute.xlu2 %352  ;;  %542 = vperm.xlu2 %1881, %v2151_v5   ;;  %538 = vperm.xlu1 %1883, %v2130_v1   ;;  %v328_v50 = vmul.f32 %v2275_v31, %v286_v40 }
  0xa3   : > { %v2292_v42 = vmul.f32 %v2280_v34, %v353_v41  ;;  %566 = vperm.xlu0 %1882, %v2192_v12  }
  0xa9   : > { %v2296_v44 = vpop.permute.xlu1 %305  ;;  %v301_v45 = vpop.permute.xlu0 %300 }
  0xaa   : > { %v361_v46 = vpop.permute.xlu2 %360  ;;  %550 = vperm.xlu2 %1881, %v2146_v4   ;;  %546 = vperm.xlu1 %1883, %v2125_v0   ;;  %v331_v58 = vmul.f32 %v2275_v31, %v301_v45  ;;  %v2340_v45 = vperm.slane %v2271_v30, 2 }
  0xab   : > { %v406_v47 = vmul.f32 %v2280_v34, %v361_v46  ;;  %578 = vperm.xlu0 %1882, %v2210_v15   ;;  %v321_v46 = vmul.f32 %v2275_v31, %v2257_v23  ;;  %v329_v23 = vmul.f32 %v2275_v31, %v2287_v39 }
  0xad   : > { %v2302_v48 = vadd.f32 %v406_v47, %v325_v43  ;;  %v2040_v47 = vmov 4  }
  0xb1   : > { %v316_v51 = vpop.permute.xlu0 %315 }
  0xb2   : > { %v373_v52 = vpop.permute.xlu2 %372  ;;  %562 = vperm.xlu2 %1881, %v2164_v7   ;;  %558 = vperm.xlu1 %1883, %v2169_v8   ;;  %v337_v53 = vpop.permute.xlu1 %336  ;;  %v334_v25 = vmul.f32 %v2275_v31, %v316_v51 }
  0xb3   : > { %v409_v54 = vmul.f32 %v2280_v34, %v373_v52  ;;  %v400_v55 = vmul.f32 %v2280_v34, %v337_v53  ;;  %590 = vperm.xlu0 %1882, %v2218_v16  }
  0xb5   : > { %v2311_v56 = vadd.f32 %v409_v54, %v328_v50  ;;  %v2313_v57 = vadd.f32 %v400_v55, %v319_v49 }
  0xba   : > { %v385_v59 = vpop.permute.xlu2 %384  ;;  %574 = vperm.xlu2 %1881, %v2182_v10   ;;  %570 = vperm.xlu1 %1883, %v2187_v11   ;;  %v349_v60 = vpop.permute.xlu1 %348 }
  0xbb   : > { %v412_v61 = vmul.f32 %v2280_v34, %v385_v59  ;;  %v2320_v62 = vmul.f32 %v2280_v34, %v349_v60  ;;  %1890 = vset.pattern.permute.xlu0 %v2039_v63  ;;  %v345_v17 = vpop.permute.xlu0 %344  ;;  %v323_v60 = vmul.f32 %v2275_v31, %v2238_v19 }
  0xbc   : > { %v402_v18 = vmul.f32 %v2280_v34, %v345_v17  ;;  %772 = vperm.xlu0 %1890, %v2210_v15   ;;  %v330_v17 = vmul.f32 %v2275_v31, %v2255_v22 }
  0xbd   : > { %v2325_v24 = vadd.f32 %v412_v61, %v331_v58  ;;  %v420_v39 = vadd.f32 %v2292_v42, %v323_v60 }
  0xbe   : > { %v418_v53 = vadd.f32 %v402_v18, %v321_v46 }
  0xc2   : > { %v397_v28 = vpop.permute.xlu2 %396  ;;  %586 = vperm.xlu2 %1881, %v2200_v13   ;;  %582 = vperm.xlu1 %1883, %v2205_v14   ;;  %v357_v29 = vpop.permute.xlu1 %356 }
  0xc3   : > { %v415_v32 = vmul.f32 %v2280_v34, %v397_v28  ;;  %v2332_v35 = vmul.f32 %v2280_v34, %v357_v29  ;;  %v365_v36 = vpop.permute.xlu0 %364  ;;  %v332_v29 = vmul.f32 %v2275_v31, %v2296_v44  ;;  %v333_v44 = vmul.f32 %v2275_v31, %v2265_v26 }
  0xc4   : > { %v407_v40 = vmul.f32 %v2280_v34, %v365_v36  ;;  %760 = vperm.xlu0 %1890, %v2192_v12  }
  0xc5   : > { %v2337_v41 = vadd.f32 %v415_v32, %v334_v25 }
  0xc6   : > { %v423_v43 = vadd.f32 %v407_v40, %v326_v37 }
  0xca   : > { %1885 = vset.pattern.permute.xlu2 %v2040_v47  ;;  %1884 = vset.pattern.permute.xlu1 %v2040_v47  ;;  %v369_v49 = vpop.permute.xlu1 %368 }
  0xcb   : > { %v408_v50 = vmul.f32 %v2280_v34, %v369_v49  ;;  %v377_v51 = vpop.permute.xlu0 %376  ;;  %v442_v52 = vpop.permute.xlu2 %441  ;;  %683 = vperm.xlu2 %1885, %v2200_v13   ;;  %627 = vperm.xlu1 %1884, %v2135_v2  }
  0xcc   : > { %v410_v54 = vmul.f32 %v2280_v34, %v377_v51  ;;  %v499_v55 = vmul.f32 %v2340_v45, %v442_v52  ;;  %748 = vperm.xlu0 %1890, %v2174_v9  }
  0xcd   : > { %v2356_v58 = vadd.f32 %v408_v50, %v327_v33 }
  0xce   : > { %v426_v21 = vadd.f32 %v410_v54, %v329_v23  ;;  %v2358_v59 = vadd.f32 %v499_v55, %v418_v53 }
  0xd2   : > { %v381_v61 = vpop.permute.xlu1 %380 }
  0xd3   : > { %v411_v18 = vmul.f32 %v2280_v34, %v381_v61  ;;  %v389_v25 = vpop.permute.xlu0 %388  ;;  %v450_v28 = vpop.permute.xlu2 %449  ;;  %1887 = vset.pattern.permute.xlu2 %v2039_v63  ;;  %1886 = vset.pattern.permute.xlu1 %v2039_v63 }
  0xd4   : > { %v413_v32 = vmul.f32 %v2280_v34, %v389_v25  ;;  %v501_v19 = vmul.f32 %v2340_v45, %v450_v28  ;;  %1905 = vset.pattern.permute.xlu0 %v2040_v47  ;;  %784 = vperm.xlu2 %1887, %v2218_v16  }
  0xd5   : > { %v2374_v22 = vadd.f32 %v411_v18, %v330_v17  ;;  %780 = vperm.xlu1 %1886, %v2200_v13   ;;  %687 = vperm.xlu0 %1905, %v2218_v16  }
  0xd6   : > { %v429_v42 = vadd.f32 %v413_v32, %v332_v29  ;;  %v2378_v36 = vadd.f32 %v501_v19, %v420_v39 }
  0xda   : > { %v393_v37 = vpop.permute.xlu1 %392 }
  0xdb   : > { %v414_v40 = vmul.f32 %v2280_v34, %v393_v37  ;;  %v462_v46 = vpop.permute.xlu2 %461  ;;  %v324_v34 = vmul.f32 %v2275_v31, %v2243_v20 }
  0xdc   : > { %v504_v49 = vmul.f32 %v2340_v45, %v462_v46  ;;  %v434_v33 = vpop.permute.xlu0 %433  ;;  %1889 = vset.pattern.permute.xlu2 %v2040_v47 }
  0xdd   : > { %v2385_v50 = vadd.f32 %v414_v40, %v333_v44  ;;  %v497_v13 = vmul.f32 %v2340_v45, %v434_v33  ;;  %1888 = vset.pattern.permute.xlu1 %v2040_v47  ;;  %671 = vperm.xlu0 %1905, %v2182_v10   ;;  %v421_v55 = vadd.f32 %v2332_v35, %v324_v34  ;;  %v829_v33 = vld [vmem:[%s2844_s2 + $0x48] sm:$0xff] }
  0xde   : > { %v2390_v16 = vadd.f32 %v504_v49, %v423_v43  ;;  %679 = vperm.xlu2 %1889, %v2205_v14   ;;  %675 = vperm.xlu1 %1888, %v2210_v15   ;;  %v834_v43 = vld [vmem:[%s2844_s2 + $0x70] sm:$0xff]  ;;  %v322_v35 = vmul.f32 %v2275_v31, %v2267_v27 }
  0xdf   : > { %v513_v26 = vadd.f32 %v497_v13, %v2313_v57 }
  0xe0   : > { %v419_v39 = vadd.f32 %v2320_v62, %v322_v35  ;;  %v2430_v62 = vperm.slane %v2271_v30, 3 }
  0xe3   : > { %v474_v51 = vpop.permute.xlu2 %473  ;;  %v438_v52 = vpop.permute.xlu1 %437 }
  0xe4   : > { %v507_v23 = vmul.f32 %v2340_v45, %v474_v51  ;;  %v498_v53 = vmul.f32 %v2340_v45, %v438_v52  ;;  %v454_v54 = vpop.permute.xlu0 %453  ;;  %v833_v52 = vld [vmem:[%s2844_s2 + $0x68] sm:$0xff] }
  0xe5   : > { %v502_v15 = vmul.f32 %v2340_v45, %v454_v54  ;;  %659 = vperm.xlu0 %1905, %v2164_v7  }
  0xe6   : > { %v2405_v57 = vadd.f32 %v507_v23, %v426_v21  ;;  %v2408_v20 = vadd.f32 %v498_v53, %v2285_v38  ;;  %1892 = vset.pattern.permute.xlu2 %v2035_v3  ;;  %1891 = vset.pattern.permute.xlu1 %v2039_v63  ;;  %v832_v23 = vld [vmem:[%s2844_s2 + $0x60] sm:$0xff] }
  0xe7   : > { %v518_v60 = vadd.f32 %v502_v15, %v421_v55  ;;  %908 = vperm.xlu2 %1892, %v834_v43   ;;  %776 = vperm.xlu1 %1891, %v2205_v14   ;;  %v835_v14 = vld [vmem:[%s2844_s2 + $0x78] sm:$0xff] }
  0xeb   : > { %v486_v61 = vpop.permute.xlu2 %485  ;;  %v446_v17 = vpop.permute.xlu1 %445 }
  0xec   : > { %v510_v21 = vmul.f32 %v2340_v45, %v486_v61  ;;  %v500_v38 = vmul.f32 %v2340_v45, %v446_v17  ;;  %v466_v18 = vpop.permute.xlu0 %465 }
  0xed   : > { %v505_v25 = vmul.f32 %v2340_v45, %v466_v18  ;;  %639 = vperm.xlu0 %1905, %v2151_v5  }
  0xee   : > { %v2423_v28 = vadd.f32 %v510_v21, %v429_v42  ;;  %v516_v27 = vadd.f32 %v500_v38, %v419_v39 }
  0xef   : > { %v521_v31 = vadd.f32 %v505_v25, %v2356_v58  ;;  %1894 = vset.pattern.permute.xlu2 %v2040_v47  ;;  %1893 = vset.pattern.permute.xlu1 %v2035_v3 }
  0xf0   : > { %667 = vperm.xlu2 %1894, %v2187_v11   ;;  %913 = vperm.xlu1 %1893, %v835_v14  }
  0xf3   : > { %v458_v29 = vpop.permute.xlu1 %457 }
  0xf4   : > { %v503_v32 = vmul.f32 %v2340_v45, %v458_v29  ;;  %v478_v19 = vpop.permute.xlu0 %477  ;;  %v531_v37 = vpop.permute.xlu2 %530 }
  0xf5   : > { %v508_v42 = vmul.f32 %v2340_v45, %v478_v19  ;;  %v594_v44 = vmul.f32 %v2430_v62, %v531_v37  ;;  %631 = vperm.xlu0 %1905, %v2156_v6  }
  0xf6   : > { %v519_v58 = vadd.f32 %v503_v32, %v2302_v48 }
  0xf7   : > { %v524_v40 = vadd.f32 %v508_v42, %v2374_v22  ;;  %v2438_v46 = vadd.f32 %v594_v44, %v513_v26 }
  0xf8   : > { %1896 = vset.pattern.permute.xlu2 %v2039_v63  ;;  %1895 = vset.pattern.permute.xlu1 %v2039_v63 }
  0xf9   : > { %768 = vperm.xlu2 %1896, %v2182_v10   ;;  %764 = vperm.xlu1 %1895, %v2187_v11  }
  0xfb   : > { %v470_v49 = vpop.permute.xlu1 %469 }
  0xfc   : > { %v506_v13 = vmul.f32 %v2340_v45, %v470_v49  ;;  %v490_v48 = vpop.permute.xlu0 %489  ;;  %v543_v34 = vpop.permute.xlu2 %542 }
  0xfd   : > { %v511_v22 = vmul.f32 %v2340_v45, %v490_v48  ;;  %v597_v26 = vmul.f32 %v2430_v62, %v543_v34  ;;  %1918 = vset.pattern.permute.xlu0 %v2035_v3 }
  0xfe   : > { %v522_v51 = vadd.f32 %v506_v13, %v2311_v56  ;;  %883 = vperm.xlu0 %1918, %v829_v33  }
  0xff   : > { %v2453_v10 = vadd.f32 %v511_v22, %v2385_v50  ;;  %v2455_v11 = vadd.f32 %v597_v26, %v516_v27  ;;  %v826_v50 = vld [vmem:[%s2844_s2 + $0x30] sm:$0xff] }
 0x101   : > { %1898 = vset.pattern.permute.xlu2 %v2035_v3  ;;  %1897 = vset.pattern.permute.xlu1 %v2035_v3 }
 0x102   : > { %903 = vperm.xlu2 %1898, %v833_v52   ;;  %898 = vperm.xlu1 %1897, %v832_v23  }
 0x103   : > { %v482_v56 = vpop.permute.xlu1 %481 }
 0x104   : > { %v509_v53 = vmul.f32 %v2340_v45, %v482_v56  ;;  %v551_v54 = vpop.permute.xlu2 %550 }
 0x105   : > { %v599_v43 = vmul.f32 %v2430_v62, %v551_v54  ;;  %v535_v55 = vpop.permute.xlu0 %534 }
 0x106   : > { %v2471_v15 = vadd.f32 %v509_v53, %v2325_v24  ;;  %v595_v35 = vmul.f32 %v2430_v62, %v535_v55  ;;  %868 = vperm.xlu0 %1918, %v826_v50   ;;  %v827_v55 = vld [vmem:[%s2844_s2 + $0x38] sm:$0xff] }
 0x107   : > { %v2474_v61 = vadd.f32 %v599_v43, %v518_v60 }
 0x108   : > { %v2477_v17 = vadd.f32 %v595_v35, %v2408_v20 }
 0x10a   : > { %1900 = vset.pattern.permute.xlu2 %v2039_v63  ;;  %1899 = vset.pattern.permute.xlu1 %v2040_v47 }
 0x10b   : > { %756 = vperm.xlu2 %1900, %v2164_v7   ;;  %663 = vperm.xlu1 %1899, %v2192_v12   ;;  %v494_v39 = vpop.permute.xlu1 %493  ;;  %v831_v7 = vld [vmem:[%s2844_s2 + $0x58] sm:$0xff]  ;;  %v830_v12 = vld [vmem:[%s2844_s2 + $0x50] sm:$0xff] }
 0x10c   : > { %v512_v24 = vmul.f32 %v2340_v45, %v494_v39  ;;  %v563_v21 = vpop.permute.xlu2 %562  ;;  %v2567_v39 = vperm.slane %v2271_v30, 5 }
 0x10d   : > { %v602_v38 = vmul.f32 %v2430_v62, %v563_v21  ;;  %v555_v18 = vpop.permute.xlu0 %554 }
 0x10e   : > { %v2486_v60 = vadd.f32 %v512_v24, %v2337_v41  ;;  %v600_v20 = vmul.f32 %v2430_v62, %v555_v18 }
 0x10f   : > { %v2489_v25 = vadd.f32 %v602_v38, %v521_v31 }
 0x110   : > { %v2491_v14 = vadd.f32 %v600_v20, %v519_v58 }
 0x113   : > { %1902 = vset.pattern.permute.xlu2 %v2035_v3  ;;  %1901 = vset.pattern.permute.xlu1 %v2035_v3 }
 0x114   : > { %893 = vperm.xlu2 %1902, %v831_v7   ;;  %888 = vperm.xlu1 %1901, %v830_v12   ;;  %v575_v41 = vpop.permute.xlu2 %574  ;;  %v539_v45 = vpop.permute.xlu1 %538 }
 0x115   : > { %v605_v27 = vmul.f32 %v2430_v62, %v575_v41  ;;  %v596_v31 = vmul.f32 %v2430_v62, %v539_v45  ;;  %v567_v29 = vpop.permute.xlu0 %566  ;;  %v824_v41 = vld [vmem:[%s2844_s2 + $0x20] sm:$0xff] }
 0x116   : > { %v603_v32 = vmul.f32 %v2430_v62, %v567_v29 }
 0x117   : > { %v2504_v19 = vadd.f32 %v605_v27, %v524_v40  ;;  %v2507_v37 = vadd.f32 %v596_v31, %v2358_v59  ;;  %v828_v59 = vld [vmem:[%s2844_s2 + $0x40] sm:$0xff] }
 0x118   : > { %v2509_v42 = vadd.f32 %v603_v32, %v522_v51  ;;  %v822_v51 = vld [vmem:[%s2844_s2 + $0x10] sm:$0xff] }
 0x119   : > { %848 = vperm.xlu0 %1918, %v822_v51  }
 0x11c   : > { %1904 = vset.pattern.permute.xlu2 %v2040_v47  ;;  %1903 = vset.pattern.permute.xlu1 %v2040_v47  ;;  %v547_v44 = vpop.permute.xlu1 %546  ;;  %v587_v58 = vpop.permute.xlu2 %586 }
 0x11d   : > { %655 = vperm.xlu2 %1904, %v2169_v8   ;;  %651 = vperm.xlu1 %1903, %v2174_v9   ;;  %v598_v49 = vmul.f32 %v2430_v62, %v547_v44  ;;  %v2516_v33 = vpop.permute.xlu0 %578 }
 0x11f   : > { %v2519_v40 = vadd.f32 %v598_v49, %v2378_v36 }
 0x124   : > { %v559_v13 = vpop.permute.xlu1 %558 }
 0x125   : > { %1907 = vset.pattern.permute.xlu2 %v2035_v3  ;;  %1906 = vset.pattern.permute.xlu1 %v2039_v63  ;;  %v601_v48 = vmul.f32 %v2430_v62, %v559_v13  ;;  %v591_v34 = vpop.permute.xlu0 %590  ;;  %v684_v36 = vpop.permute.xlu2 %683 }
 0x126   : > { %878 = vperm.xlu2 %1907, %v828_v59   ;;  %752 = vperm.xlu1 %1906, %v2169_v8   ;;  %v609_v31 = vmul.f32 %v2430_v62, %v591_v34 }
 0x127   : > { %v2529_v9 = vadd.f32 %v601_v48, %v2390_v16 }
 0x128   : > { %v625_v13 = vadd.f32 %v609_v31, %v2486_v60 }
 0x12c   : > { %v571_v22 = vpop.permute.xlu1 %570 }
 0x12d   : > { %v604_v26 = vmul.f32 %v2430_v62, %v571_v22 }
 0x12e   : > { %1909 = vset.pattern.permute.xlu2 %v2040_v47  ;;  %1908 = vset.pattern.permute.xlu1 %v2040_v47  ;;  %v2537_v52 = vpop.permute.xlu0 %772  ;;  %v785_v8 = vpop.permute.xlu2 %784 }
 0x12f   : > { %v2540_v23 = vadd.f32 %v604_v26, %v2405_v57  ;;  %647 = vperm.xlu2 %1909, %v2146_v4   ;;  %643 = vperm.xlu1 %1908, %v2125_v0   ;;  %v2551_v57 = vperm.slane %v2271_v30, 4  ;;  %v803_v34 = vmul.f32 %v2567_v39, %v785_v8 }
 0x131   : > { %v705_v24 = vmul.f32 %v2551_v57, %v684_v36 }
 0x134   : > { %v583_v16 = vpop.permute.xlu1 %582 }
 0x136   : > { %v2544_v56 = vpop.permute.xlu0 %760 }
 0x137   : > { %1911 = vset.pattern.permute.xlu2 %v2039_v63  ;;  %1910 = vset.pattern.permute.xlu1 %v2039_v63 }
 0x138   : > { %744 = vperm.xlu2 %1911, %v2146_v4   ;;  %740 = vperm.xlu1 %1910, %v2125_v0   ;;  %v680_v50 = vpop.permute.xlu2 %679  ;;  %v608_v4 = vmul.f32 %v2430_v62, %v587_v58 }
 0x139   : > { %v704_v44 = vmul.f32 %v2551_v57, %v680_v50 }
 0x13d   : > { %v628_v53 = vpop.permute.xlu1 %627 }
 0x13e   : > { %v691_v54 = vmul.f32 %v2551_v57, %v628_v53  ;;  %v2554_v43 = vpop.permute.xlu0 %748 }
 0x140   : > { %v2560_v35 = vadd.f32 %v691_v54, %v2438_v46  ;;  %1913 = vset.pattern.permute.xlu2 %v2040_v47  ;;  %1912 = vset.pattern.permute.xlu1 %v2035_v3  ;;  %v624_v46 = vadd.f32 %v608_v4, %v2453_v10  ;;  %v825_v10 = vld [vmem:[%s2844_s2 + $0x28] sm:$0xff] }
 0x141   : > { %635 = vperm.xlu2 %1913, %v2130_v1   ;;  %873 = vperm.xlu1 %1912, %v827_v55   ;;  %v909_v0 = vpop.permute.xlu2 %908 }
 0x142   : > { %v721_v30 = vadd.f32 %v705_v24, %v624_v46 }
 0x147   : > { %v781_v21 = vpop.permute.xlu1 %780  ;;  %v688_v38 = vpop.permute.xlu0 %687 }
 0x148   : > { %v802_v18 = vmul.f32 %v2567_v39, %v781_v21  ;;  %v706_v49 = vmul.f32 %v2551_v57, %v688_v38 }
 0x149   : > { %1915 = vset.pattern.permute.xlu2 %v2039_v63  ;;  %1914 = vset.pattern.permute.xlu1 %v2039_v63 }
 0x14a   : > { %736 = vperm.xlu2 %1915, %v2151_v5   ;;  %v2575_v47 = vpop.permute.xlu2 %667  ;;  %732 = vperm.xlu1 %1914, %v2130_v1   ;;  %v818_v20 = vadd.f32 %v802_v18, %v721_v30  ;;  %v607_v5 = vmul.f32 %v2430_v62, %v583_v16  ;;  %v722_v26 = vadd.f32 %v706_v49, %v625_v13 }
 0x14b   : > { %v606_v18 = vmul.f32 %v2430_v62, %v2516_v33 }
 0x14c   : > { %v2584_v45 = vadd.f32 %v909_v0, %v818_v20  ;;  %v623_v32 = vadd.f32 %v607_v5, %v2423_v28  ;;  %v819_v53 = vadd.f32 %v803_v34, %v722_v26 }
 0x14e   : > { %v946_v27 = vmul.f32 %v2584_v45, %v2584_v45  ;;  %v720_v36 = vadd.f32 %v704_v44, %v623_v32  ;;  %v622_v32 = vadd.f32 %v606_v18, %v2471_v15 }
 0x14f   : > { %v672_v7 = vpop.permute.xlu0 %671 }
 0x150   : > { %v676_v12 = vpop.permute.xlu1 %675  ;;  %v962_v58 = vmul.f32 %v946_v27, %v2584_v45  ;;  %v702_v31 = vmul.f32 %v2551_v57, %v672_v7 }
 0x152   : > { %1917 = vset.pattern.permute.xlu2 %v2035_v3  ;;  %1916 = vset.pattern.permute.xlu1 %v2035_v3  ;;  %v978_v22 = vmul.f32 0.044715, %v962_v58  ;;  %v800_v58 = vmul.f32 %v2567_v39, %v2537_v52 }
 0x153   : > { %863 = vperm.xlu2 %1917, %v825_v10   ;;  %858 = vperm.xlu1 %1916, %v824_v41   ;;  %v769_v1 = vpop.permute.xlu2 %768  ;;  %v703_v10 = vmul.f32 %v2551_v57, %v676_v12  ;;  %v718_v12 = vadd.f32 %v702_v31, %v2504_v19 }
 0x154   : > { %v994_v50 = vadd.f32 %v978_v22, %v2584_v45  ;;  %v799_v33 = vmul.f32 %v2567_v39, %v769_v1 }
 0x155   : > { %v719_v49 = vadd.f32 %v703_v10, %v622_v32 }
 0x156   : > { %v1010_v0 = vmul.f32 0.7978846, %v994_v50  ;;  %v815_v13 = vadd.f32 %v799_v33, %v718_v12 }
 0x157   : > { %v2592_v29 = vpop.permute.xlu0 %659 }
 0x158   : > { %1923 = vtanh.f32 %v1010_v0  ;;  %v699_v50 = vmul.f32 %v2551_v57, %v2592_v29  ;;  %v797_v29 = vmul.f32 %v2567_v39, %v2544_v56 }
 0x159   : > { %v777_v59 = vpop.permute.xlu1 %776 }
 0x15a   : > { %v801_v48 = vmul.f32 %v2567_v39, %v777_v59 }
 0x15b   : > { %1920 = vset.pattern.permute.xlu2 %v2039_v63  ;;  %1919 = vset.pattern.permute.xlu1 %v2039_v63 }
 0x15c   : > { %728 = vperm.xlu2 %1920, %v2156_v6   ;;  %724 = vperm.xlu1 %1919, %v2135_v2   ;;  %v904_v28 = vpop.permute.xlu2 %903  ;;  %v817_v51 = vadd.f32 %v801_v48, %v720_v36  ;;  %v823_v2 = vld [vmem:[%s2844_s2 + $0x18] sm:$0xff]  ;;  %v820_v6 = vld [vmem:[%s2844_s2] sm:$0xff] }
 0x15e   : > { %v2616_v8 = vadd.f32 %v904_v28, %v817_v51  ;;  %v1924_v44 = vpop.eup %1923  ;;  %v816_v28 = vadd.f32 %v800_v58, %v719_v49 }
 0x15f   : > { %v640_v16 = vpop.permute.xlu0 %639  ;;  %v1042_v48 = vadd.f32 1.0, %v1924_v44 }
 0x160   : > { %v694_v60 = vmul.f32 %v2551_v57, %v640_v16  ;;  %v945_v24 = vmul.f32 %v2616_v8, %v2616_v8 }
 0x161   : > { %v1058_v26 = vmul.f32 0.5, %v1042_v48 }
 0x162   : > { %v2608_v54 = vadd.f32 %v694_v60, %v2455_v11  ;;  %v914_v63 = vpop.permute.xlu1 %913  ;;  %v961_v41 = vmul.f32 %v945_v24, %v2616_v8 }
 0x163   : > { %v931_v55 = vadd.f32 %v914_v63, %v819_v53 }
 0x164   : > { %1921 = vset.pattern.permute.xlu1 %v2035_v3  ;;  %1922 = vset.pattern.permute.xlu2 %v2035_v3  ;;  %v821_v3 = vld [vmem:[%s2844_s2 + $0x8] sm:$0xff]  ;;  %v977_v59 = vmul.f32 0.044715, %v961_v41 }
 0x165   : > { %v947_v4 = vmul.f32 %v931_v55, %v931_v55  ;;  %v757_v11 = vpop.permute.xlu2 %756  ;;  %853 = vperm.xlu1 %1921, %v823_v2   ;;  %838 = vperm.xlu2 %1922, %v820_v6   ;;  %v1074_v2 = vmul.f32 %v1058_v26, %v2584_v45  ;;  %v701_v45 = vmul.f32 %v2551_v57, %v2575_v47 }
 0x166   : > { %v993_v7 = vadd.f32 %v977_v59, %v2616_v8  ;;  %v796_v6 = vmul.f32 %v2567_v39, %v757_v11 }
 0x167   : > { %v963_v21 = vmul.f32 %v947_v4, %v931_v55  ;;  %v632_v38 = vpop.permute.xlu0 %631  ;;  %v717_v32 = vadd.f32 %v701_v45, %v2540_v23 }
 0x168   : > { %v692_v46 = vmul.f32 %v2551_v57, %v632_v38  ;;  %v1009_v51 = vmul.f32 0.7978846, %v993_v7 }
 0x169   : > { %v979_v30 = vmul.f32 0.044715, %v963_v21  ;;  %v715_v21 = vadd.f32 %v699_v50, %v2489_v25 }
 0x16a   : > { %v2626_v20 = vadd.f32 %v692_v46, %v2477_v17 }
 0x16b   : > { %v995_v5 = vadd.f32 %v979_v30, %v931_v55  ;;  %v765_v27 = vpop.permute.xlu1 %764  ;;  %v812_v11 = vadd.f32 %v796_v6, %v715_v21 }
 0x16c   : > { %v798_v41 = vmul.f32 %v2567_v39, %v765_v27 }
 0x16d   : > { %v1011_v62 = vmul.f32 0.7978846, %v995_v5  ;;  %843 = vperm.xlu1 %1921, %v821_v3  }
 0x16e   : > { %v894_v17 = vpop.permute.xlu2 %893  ;;  %v814_v58 = vadd.f32 %v798_v41, %v717_v32 }
 0x16f   : > { %1925 = vtanh.f32 %v1011_v62  ;;  %v2640_v15 = vadd.f32 %v894_v17, %v815_v13 }
 0x170   : > { %1927 = vtanh.f32 %v1009_v51  ;;  %v884_v5 = vpop.permute.xlu0 %883 }
 0x171   : > { %v943_v60 = vmul.f32 %v2640_v15, %v2640_v15 }
 0x173   : > { %v959_v4 = vmul.f32 %v943_v60, %v2640_v15 }
 0x174   : > { %v899_v34 = vpop.permute.xlu1 %898 }
 0x175   : > { %v1926_v36 = vpop.eup %1925  ;;  %v2642_v1 = vadd.f32 %v899_v34, %v816_v28  ;;  %v975_v30 = vmul.f32 0.044715, %v959_v4 }
 0x176   : > { %v1043_v22 = vadd.f32 1.0, %v1926_v36  ;;  %v1928_v10 = vpop.eup %1927 }
 0x177   : > { %v944_v52 = vmul.f32 %v2642_v1, %v2642_v1  ;;  %v2646_v16 = vpop.permute.xlu2 %655  ;;  %v1041_v33 = vadd.f32 1.0, %v1928_v10  ;;  %v991_v47 = vadd.f32 %v975_v30, %v2640_v15 }
 0x178   : > { %v1059_v19 = vmul.f32 0.5, %v1043_v22 }
 0x179   : > { %v960_v53 = vmul.f32 %v944_v52, %v2642_v1  ;;  %v1057_v48 = vmul.f32 0.5, %v1041_v33  ;;  %v1007_v27 = vmul.f32 0.7978846, %v991_v47 }
 0x17a   : > { %v1075_v63 = vmul.f32 %v1059_v19, %v931_v55 }
 0x17b   : > { %v976_v0 = vmul.f32 0.044715, %v960_v53  ;;  %v1073_v19 = vmul.f32 %v1057_v48, %v2616_v8  ;;  %v794_v8 = vmul.f32 %v2567_v39, %v2554_v43 }
 0x17c   : > { %v1099_v24 = vpack.c.bf16 %v1075_v63, %v1074_v2 }
 0x17d   : > { %v992_v38 = vadd.f32 %v976_v0, %v2642_v1  ;;  %v664_v46 = vpop.permute.xlu1 %663 }
 0x17e   : > { %v700_v18 = vmul.f32 %v2551_v57, %v664_v46  ;;  %1148 = vmatpush.bf16.msra.mxu0 %v1099_v24  ;;  %1786 = vmatpush.bf16.msra.mxu1 %v1099_v24 }
 0x17f   : > { %v1008_v55 = vmul.f32 0.7978846, %v992_v38  ;;  %1787 = vmatpush.bf16.msra.mxu2 %v1099_v24  ;;  %1788 = vmatpush.bf16.msra.mxu3 %v1099_v24 }
 0x180   : > { %v716_v25 = vadd.f32 %v700_v18, %v2509_v42  ;;  %v879_v3 = vpop.permute.xlu2 %878 }
 0x181   : > { %1929 = vtanh.f32 %v1008_v55  ;;  %v924_v56 = vadd.f32 %v879_v3, %v812_v11 }
 0x182   : > { %v813_v31 = vadd.f32 %v797_v29, %v716_v25  ;;  %1931 = vtanh.f32 %v1007_v27 }
 0x183   : > { %v940_v62 = vmul.f32 %v924_v56, %v924_v56 }
 0x184   : > { %v925_v17 = vadd.f32 %v884_v5, %v813_v31 }
 0x185   : > { %v956_v44 = vmul.f32 %v940_v62, %v924_v56 }
 0x186   : > { %v941_v49 = vmul.f32 %v925_v17, %v925_v17  ;;  %v889_v59 = vpop.permute.xlu1 %888 }
 0x187   : > { %v1930_v42 = vpop.eup %1929  ;;  %v972_v12 = vmul.f32 0.044715, %v956_v44  ;;  %v926_v13 = vadd.f32 %v889_v59, %v814_v58  ;;  %v869_v44 = vpop.permute.xlu0 %868 }
 0x188   : > { %v1040_v7 = vadd.f32 1.0, %v1930_v42  ;;  %v957_v28 = vmul.f32 %v941_v49, %v925_v17  ;;  %v1932_v21 = vpop.eup %1931 }
 0x189   : > { %v988_v34 = vadd.f32 %v972_v12, %v924_v56  ;;  %v942_v36 = vmul.f32 %v926_v13, %v926_v13  ;;  %v2667_v22 = vpop.permute.xlu2 %647  ;;  %v1039_v55 = vadd.f32 1.0, %v1932_v21  ;;  %v698_v12 = vmul.f32 %v2551_v57, %v2646_v16 }
 0x18a   : > { %v1056_v23 = vmul.f32 0.5, %v1040_v7  ;;  %v973_v26 = vmul.f32 0.044715, %v957_v28 }
 0x18b   : > { %v1004_v51 = vmul.f32 0.7978846, %v988_v34  ;;  %v958_v52 = vmul.f32 %v942_v36, %v926_v13  ;;  %v1055_v41 = vmul.f32 0.5, %v1039_v55  ;;  %v714_v28 = vadd.f32 %v698_v12, %v2529_v9 }
 0x18c   : > { %v1072_v60 = vmul.f32 %v1056_v23, %v2642_v1  ;;  %v989_v50 = vadd.f32 %v973_v26, %v925_v17 }
 0x18d   : > { %1933 = vtanh.f32 %v1004_v51  ;;  %v974_v53 = vmul.f32 0.044715, %v958_v52 }
 0x18e   : > { %v1005_v63 = vmul.f32 0.7978846, %v989_v50  ;;  %v1098_v2 = vpack.c.bf16 %v1073_v19, %v1072_v60 }
 0x18f   : > { %v990_v6 = vadd.f32 %v974_v53, %v926_v13  ;;  %v652_v0 = vpop.permute.xlu1 %651 }
 0x190   : > { %1935 = vtanh.f32 %v1005_v63  ;;  %v697_v4 = vmul.f32 %v2551_v57, %v652_v0  ;;  %1149 = vmatpush.bf16.msra.mxu0 %v1098_v2  ;;  %1789 = vmatpush.bf16.msra.mxu1 %v1098_v2 }
 0x191   : > { %v1006_v24 = vmul.f32 0.7978846, %v990_v6  ;;  %1790 = vmatpush.bf16.msra.mxu2 %v1098_v2  ;;  %1791 = vmatpush.bf16.msra.mxu3 %v1098_v2 }
 0x192   : > { %v713_v1 = vadd.f32 %v697_v4, %v2491_v14  ;;  %v745_v46 = vpop.permute.xlu2 %744  ;;  %v1071_v14 = vmul.f32 %v1055_v41, %v2640_v15 }
 0x193   : > { %v1934_v38 = vpop.eup %1933  ;;  %1937 = vtanh.f32 %v1006_v24  ;;  %v793_v48 = vmul.f32 %v2567_v39, %v745_v46 }
 0x194   : > { %v1036_v29 = vadd.f32 1.0, %v1934_v38  ;;  %v810_v18 = vadd.f32 %v794_v8, %v713_v1 }
 0x196   : > { %v1936_v45 = vpop.eup %1935  ;;  %v1052_v11 = vmul.f32 0.5, %v1036_v29  ;;  %v2676_v59 = vadd.f32 %v869_v44, %v810_v18 }
 0x197   : > { %v1037_v30 = vadd.f32 1.0, %v1936_v45  ;;  %v849_v45 = vpop.permute.xlu0 %848 }
 0x198   : > { %v753_v25 = vpop.permute.xlu1 %752  ;;  %v1068_v31 = vmul.f32 %v1052_v11, %v924_v56  ;;  %v938_v42 = vmul.f32 %v2676_v59, %v2676_v59 }
 0x199   : > { %v1938_v3 = vpop.eup %1937  ;;  %v1053_v10 = vmul.f32 0.5, %v1037_v30  ;;  %v795_v7 = vmul.f32 %v2567_v39, %v753_v25 }
 0x19a   : > { %v1038_v5 = vadd.f32 1.0, %v1938_v3  ;;  %v954_v15 = vmul.f32 %v938_v42, %v2676_v59 }
 0x19b   : > { %v1069_v32 = vmul.f32 %v1053_v10, %v925_v17  ;;  %v636_v43 = vpop.permute.xlu2 %635  ;;  %v811_v51 = vadd.f32 %v795_v7, %v714_v28 }
 0x19c   : > { %v1054_v62 = vmul.f32 0.5, %v1038_v5  ;;  %v970_v27 = vmul.f32 0.044715, %v954_v15  ;;  %v693_v9 = vmul.f32 %v2551_v57, %v636_v43 }
 0x19d   : > { %v1096_v33 = vpack.c.bf16 %v1069_v32, %v1068_v31 }
 0x19e   : > { %v1070_v47 = vmul.f32 %v1054_v62, %v926_v13  ;;  %v696_v13 = vmul.f32 %v2551_v57, %v2667_v22  ;;  %v986_v23 = vadd.f32 %v970_v27, %v2676_v59  ;;  %v709_v8 = vadd.f32 %v693_v9, %v2507_v37 }
 0x1a0   : > { %v1097_v58 = vpack.c.bf16 %v1071_v14, %v1070_v47  ;;  %v712_v34 = vadd.f32 %v696_v13, %v2474_v61  ;;  %v1002_v60 = vmul.f32 0.7978846, %v986_v23 }
 0x1a1   : > { %v644_v49 = vpop.permute.xlu1 %643 }
 0x1a2   : > { %1150 = vmatpush.bf16.msra.mxu0 %v1097_v58  ;;  %1792 = vmatpush.bf16.msra.mxu1 %v1097_v58  ;;  %v809_v26 = vadd.f32 %v793_v48, %v712_v34  ;;  %1939 = vtanh.f32 %v1002_v60  ;;  %v695_v0 = vmul.f32 %v2551_v57, %v644_v49 }
 0x1a3   : > { %1793 = vmatpush.bf16.msra.mxu2 %v1097_v58  ;;  %1794 = vmatpush.bf16.msra.mxu3 %v1097_v58 }
 0x1a4   : > { %v2680_v56 = vpop.permute.xlu2 %736  ;;  %v711_v46 = vadd.f32 %v695_v0, %v2519_v40 }
 0x1a6   : > { %1151 = vmatpush.bf16.msra.mxu0 %v1096_v33  ;;  %1795 = vmatpush.bf16.msra.mxu1 %v1096_v33 }
 0x1a7   : > { %1796 = vmatpush.bf16.msra.mxu2 %v1096_v33  ;;  %1797 = vmatpush.bf16.msra.mxu3 %v1096_v33 }
 0x1a8   : > { %v1940_v21 = vpop.eup %1939 }
 0x1a9   : > { %v1034_v18 = vadd.f32 1.0, %v1940_v21 }
 0x1aa   : > { %v741_v17 = vpop.permute.xlu1 %740 }
 0x1ab   : > { %v792_v1 = vmul.f32 %v2567_v39, %v741_v17  ;;  %v1050_v10 = vmul.f32 0.5, %v1034_v18 }
 0x1ad   : > { %v864_v36 = vpop.permute.xlu2 %863  ;;  %v808_v11 = vadd.f32 %v792_v1, %v711_v46  ;;  %v1066_v43 = vmul.f32 %v1050_v10, %v2676_v59  ;;  %v791_v59 = vmul.f32 %v2567_v39, %v2680_v56 }
 0x1ae   : > { %v2692_v19 = vadd.f32 %v864_v36, %v809_v26 }
 0x1af   : > { %v807_v36 = vadd.f32 %v791_v59, %v2608_v54 }
 0x1b0   : > { %v937_v50 = vmul.f32 %v2692_v19, %v2692_v19 }
 0x1b2   : > { %v953_v61 = vmul.f32 %v937_v50, %v2692_v19 }
 0x1b3   : > { %v874_v52 = vpop.permute.xlu1 %873 }
 0x1b4   : > { %v923_v16 = vadd.f32 %v874_v52, %v811_v51  ;;  %v969_v38 = vmul.f32 0.044715, %v953_v61 }
 0x1b6   : > { %v939_v22 = vmul.f32 %v923_v16, %v923_v16  ;;  %v985_v55 = vadd.f32 %v969_v38, %v2692_v19  ;;  %v729_v5 = vpop.permute.xlu2 %728 }
 0x1b8   : > { %v955_v53 = vmul.f32 %v939_v22, %v923_v16  ;;  %v1001_v37 = vmul.f32 0.7978846, %v985_v55 }
 0x1ba   : > { %v971_v63 = vmul.f32 0.044715, %v955_v53 }
 0x1bc   : > { %v987_v2 = vadd.f32 %v971_v63, %v923_v16  ;;  %v733_v6 = vpop.permute.xlu1 %732 }
 0x1bd   : > { %v790_v24 = vmul.f32 %v2567_v39, %v733_v6 }
 0x1be   : > { %v1003_v4 = vmul.f32 0.7978846, %v987_v2 }
 0x1bf   : > { %v806_v29 = vadd.f32 %v790_v24, %v709_v8  ;;  %v839_v17 = vpop.permute.xlu2 %838 }
 0x1c0   : > { %1941 = vtanh.f32 %v1003_v4 }
 0x1c1   : > { %v2704_v25 = vadd.f32 %v849_v45, %v806_v29  ;;  %1943 = vtanh.f32 %v1001_v37 }
 0x1c3   : > { %v934_v40 = vmul.f32 %v2704_v25, %v2704_v25 }
 0x1c5   : > { %v859_v30 = vpop.permute.xlu1 %858  ;;  %v950_v44 = vmul.f32 %v934_v40, %v2704_v25 }
 0x1c6   : > { %v1942_v57 = vpop.eup %1941  ;;  %v920_v3 = vadd.f32 %v859_v30, %v808_v11 }
 0x1c7   : > { %v1035_v41 = vadd.f32 1.0, %v1942_v57  ;;  %v1944_v13 = vpop.eup %1943  ;;  %v966_v48 = vmul.f32 0.044715, %v950_v44  ;;  %v1784_v44 = vld [vmem:[%s2845_s3 + $0x30] sm:$0xff] }
 0x1c8   : > { %v936_v31 = vmul.f32 %v920_v3, %v920_v3  ;;  %v1033_v7 = vadd.f32 1.0, %v1944_v13 }
 0x1c9   : > { %v1051_v32 = vmul.f32 0.5, %v1035_v41  ;;  %v982_v34 = vadd.f32 %v966_v48, %v2704_v25 }
 0x1ca   : > { %v952_v62 = vmul.f32 %v936_v31, %v920_v3 }
 0x1cb   : > { %v1067_v33 = vmul.f32 %v1051_v32, %v923_v16  ;;  %v1049_v16 = vmul.f32 0.5, %v1033_v7  ;;  %v998_v22 = vmul.f32 0.7978846, %v982_v34 }
 0x1cc   : > { %v968_v14 = vmul.f32 0.044715, %v952_v62 }
 0x1cd   : > { %v1095_v47 = vpack.c.bf16 %v1067_v33, %v1066_v43  ;;  %v1065_v9 = vmul.f32 %v1049_v16, %v2692_v19 }
 0x1ce   : > { %v984_v58 = vadd.f32 %v968_v14, %v920_v3  ;;  %v725_v49 = vpop.permute.xlu1 %724  ;;  %v1778_v14 = vld [vmem:[%s2845_s3] sm:$0xff] }
 0x1cf   : > { %v788_v42 = vmul.f32 %v2567_v39, %v725_v49  ;;  %1152 = vmatpush.bf16.msra.mxu0 %v1095_v47  ;;  %1798 = vmatpush.bf16.msra.mxu1 %v1095_v47  ;;  %v1781_v49 = vld [vmem:[%s2845_s3 + $0x18] sm:$0xff] }
 0x1d0   : > { %v1000_v15 = vmul.f32 0.7978846, %v984_v58  ;;  %1799 = vmatpush.bf16.msra.mxu2 %v1095_v47  ;;  %1800 = vmatpush.bf16.msra.mxu3 %v1095_v47  ;;  %v1782_v47 = vld [vmem:[%s2845_s3 + $0x20] sm:$0xff]  ;;  %v1779_v58 = vld [vmem:[%s2845_s3 + $0x8] sm:$0xff] }
 0x1d1   : > { %v804_v12 = vadd.f32 %v788_v42, %v2560_v35  ;;  %v789_v35 = vmul.f32 %v2567_v39, %v729_v5  ;;  %v1783_v42 = vld [vmem:[%s2845_s3 + $0x28] sm:$0xff] }
 0x1d2   : > { %1945 = vtanh.f32 %v1000_v15  ;;  %v1785_v15 = vld [vmem:[%s2845_s3 + $0x38] sm:$0xff] }
 0x1d3   : > { %v916_v27 = vadd.f32 %v839_v17, %v804_v12  ;;  %1947 = vtanh.f32 %v998_v22  ;;  %v805_v54 = vadd.f32 %v789_v35, %v2626_v20  ;;  %v1197_v17 = vlaneseq }
 0x1d5   : > { %v932_v28 = vmul.f32 %v916_v27, %v916_v27  ;;  %v2744_v12 = vand.u32 127, %v1197_v17 }
 0x1d7   : > { %v948_v23 = vmul.f32 %v932_v28, %v916_v27  ;;  %v854_v26 = vpop.permute.xlu1 %853  ;;  %vm1202_vm0 = vcmp.lt.s32.totalorder %v2744_v12, 16 }
 0x1d8   : > { %v1946_v51 = vpop.eup %1945  ;;  %v919_v52 = vadd.f32 %v854_v26, %v807_v36 }
 0x1d9   : > { %v1032_v60 = vadd.f32 1.0, %v1946_v51  ;;  %v964_v50 = vmul.f32 0.044715, %v948_v23  ;;  %v1948_v38 = vpop.eup %1947 }
 0x1da   : > { %v935_v56 = vmul.f32 %v919_v52, %v919_v52  ;;  %v1030_v29 = vadd.f32 1.0, %v1948_v38 }
 0x1db   : > { %v1048_v53 = vmul.f32 0.5, %v1032_v60  ;;  %v980_v2 = vadd.f32 %v964_v50, %v916_v27 }
 0x1dc   : > { %v951_v63 = vmul.f32 %v935_v56, %v919_v52  ;;  %v1046_v55 = vmul.f32 0.5, %v1030_v29 }
 0x1dd   : > { %v1064_v61 = vmul.f32 %v1048_v53, %v920_v3  ;;  %v996_v39 = vmul.f32 0.7978846, %v980_v2 }
 0x1de   : > { %v967_v6 = vmul.f32 0.044715, %v951_v63  ;;  %v1062_v3 = vmul.f32 %v1046_v55, %v2704_v25  ;;  %v1780_v25 = vld [vmem:[%s2845_s3 + $0x10] sm:$0xff] }
 0x1df   : > { %v844_v0 = vpop.permute.xlu1 %843  ;;  %v1094_v4 = vpack.c.bf16 %v1065_v9, %v1064_v61 }
 0x1e0   : > { %v983_v24 = vadd.f32 %v967_v6, %v919_v52  ;;  %v917_v21 = vadd.f32 %v844_v0, %v805_v54 }
 0x1e1   : > { %1153 = vmatpush.bf16.msra.mxu0 %v1094_v4  ;;  %1801 = vmatpush.bf16.msra.mxu1 %v1094_v4 }
 0x1e2   : > { %v999_v8 = vmul.f32 0.7978846, %v983_v24  ;;  %v933_v1 = vmul.f32 %v917_v21, %v917_v21  ;;  %1802 = vmatpush.bf16.msra.mxu2 %v1094_v4  ;;  %1803 = vmatpush.bf16.msra.mxu3 %v1094_v4 }
 0x1e4   : > { %1949 = vtanh.f32 %v999_v8  ;;  %v949_v19 = vmul.f32 %v933_v1, %v917_v21 }
 0x1e5   : > { %1951 = vtanh.f32 %v996_v39 }
 0x1e6   : > { %v965_v46 = vmul.f32 0.044715, %v949_v19 }
 0x1e8   : > { %v981_v18 = vadd.f32 %v965_v46, %v917_v21 }
 0x1ea   : > { %v1950_v45 = vpop.eup %1949  ;;  %v997_v20 = vmul.f32 0.7978846, %v981_v18 }
 0x1eb   : > { %v1031_v11 = vadd.f32 1.0, %v1950_v45  ;;  %v1952_v30 = vpop.eup %1951 }
 0x1ec   : > { %1953 = vtanh.f32 %v997_v20  ;;  %v1028_v10 = vadd.f32 1.0, %v1952_v30 }
 0x1ed   : > { %v1047_v57 = vmul.f32 0.5, %v1031_v11 }
 0x1ee   : > { %v1044_v31 = vmul.f32 0.5, %v1028_v10 }
 0x1ef   : > { %v1063_v41 = vmul.f32 %v1047_v57, %v919_v52 }
 0x1f0   : > { %v1060_v62 = vmul.f32 %v1044_v31, %v916_v27 }
 0x1f1   : > { %v1093_v37 = vpack.c.bf16 %v1063_v41, %v1062_v3 }
 0x1f2   : > { %v1954_v5 = vpop.eup %1953 }
 0x1f3   : > { %v1029_v32 = vadd.f32 1.0, %v1954_v5  ;;  %1154 = vmatpush.bf16.msra.mxu0 %v1093_v37  ;;  %1804 = vmatpush.bf16.msra.mxu1 %v1093_v37 }
 0x1f4   : > { %1805 = vmatpush.bf16.msra.mxu2 %v1093_v37  ;;  %1806 = vmatpush.bf16.msra.mxu3 %v1093_v37 }
 0x1f5   : > { %v1045_v40 = vmul.f32 0.5, %v1029_v32 }
 0x1f7   : > { %v1061_v43 = vmul.f32 %v1045_v40, %v917_v21 }
 0x1f9   : > { %v1092_v33 = vpack.c.bf16 %v1061_v43, %v1060_v62 }
 0x1fb   : > { %1155 = vmatpush.bf16.msra.mxu0 %v1092_v33  ;;  %1807 = vmatpush.bf16.msra.mxu1 %v1092_v33 }
 0x1fc   : > { %1808 = vmatpush.bf16.msra.mxu2 %v1092_v33  ;;  %1809 = vmatpush.bf16.msra.mxu3 %v1092_v33 }
 0x1fe   : > { %1156 = vmatmul.bf16.vlgmr.msra.gmra.mxu0 %v1778_v14  ;;  %1166 = vmatmul.bf16.vlgmr.msra.gmra.mxu1 %v1780_v25 }
 0x1ff   : > { %1176 = vmatmul.bf16.vlgmr.msra.gmra.mxu2 %v1782_v47  ;;  %1186 = vmatmul.bf16.vlgmr.msra.gmra.mxu3 %v1784_v44 }
 0x20e   : > { %1161 = vmatmul.bf16.gmra.mxu0 %v1779_v58  ;;  %1171 = vmatmul.bf16.gmra.mxu1 %v1781_v49 }
 0x20f   : > { %1181 = vmatmul.bf16.gmra.mxu2 %v1783_v42  ;;  %1191 = vmatmul.bf16.gmra.mxu3 %v1785_v15 }
 0x27b   : > { %v1157_v13 = vpop.f32.mrf.mxu0  ;;  %v1167_v48 = vpop.f32.mrf.mxu1 }
 0x27c   : > { %v1203_v59 = vsel %vm1202_vm0, %v1157_v13, -inf  ;;  %v1207_v63 = vsel %vm1202_vm0, %v1167_v48, -inf }
 0x27d   : > { %1219 = vmax.xlane.f32.xlu2 %v1203_v59 }
 0x282   : > { %v1177_v28 = vpop.f32.mrf.mxu2  ;;  %v1187_v52 = vpop.f32.mrf.mxu3 }
 0x283   : > { %v1159_v27 = vpop.f32.mrf.mxu0  ;;  %v1169_v34 = vpop.f32.mrf.mxu1  ;;  %v1211_v22 = vsel %vm1202_vm0, %v1177_v28, -inf  ;;  %v1215_v4 = vsel %vm1202_vm0, %v1187_v52, -inf }
 0x284   : > { %v1204_v7 = vsel %vm1202_vm0, %v1159_v27, -inf  ;;  %v1208_v36 = vsel %vm1202_vm0, %v1169_v34, -inf }
 0x285   : > { %1221 = vmax.xlane.f32.xlu0 %v1204_v7 }
 0x28a   : > { %v1179_v51 = vpop.f32.mrf.mxu2  ;;  %v1189_v53 = vpop.f32.mrf.mxu3 }
 0x28b   : > { %v1162_v23 = vpop.f32.mrf.mxu0  ;;  %v1172_v16 = vpop.f32.mrf.mxu1  ;;  %v1212_v9 = vsel %vm1202_vm0, %v1179_v51, -inf  ;;  %v1216_v1 = vsel %vm1202_vm0, %v1189_v53, -inf }
 0x28c   : > { %v1205_v26 = vsel %vm1202_vm0, %v1162_v23, -inf  ;;  %v1209_v60 = vsel %vm1202_vm0, %v1172_v16, -inf }
 0x28d   : > { %1223 = vmax.xlane.f32.xlu1 %v1205_v26  ;;  %1229 = vmax.xlane.f32.xlu0 %v1208_v36 }
 0x292   : > { %v1182_v56 = vpop.f32.mrf.mxu2  ;;  %v1192_v2 = vpop.f32.mrf.mxu3 }
 0x293   : > { %v1164_v35 = vpop.f32.mrf.mxu0  ;;  %v1174_v54 = vpop.f32.mrf.mxu1  ;;  %v1217_v24 = vsel %vm1202_vm0, %v1192_v2, -inf  ;;  %v1213_v39 = vsel %vm1202_vm0, %v1182_v56, -inf }
 0x294   : > { %v1206_v50 = vsel %vm1202_vm0, %v1164_v35, -inf  ;;  %v1210_v0 = vsel %vm1202_vm0, %v1174_v54, -inf }
 0x295   : > { %1225 = vmax.xlane.f32.xlu2 %v1206_v50  ;;  %1231 = vmax.xlane.f32.xlu1 %v1209_v60 }
 0x296   : > { %1235 = vmax.xlane.f32.xlu0 %v1211_v22 }
 0x29a   : > { %v1184_v61 = vpop.f32.mrf.mxu2  ;;  %v1194_v21 = vpop.f32.mrf.mxu3 }
 0x29b   : > { %v1214_v6 = vsel %vm1202_vm0, %v1184_v61, -inf  ;;  %v1218_v8 = vsel %vm1202_vm0, %v1194_v21, -inf }
 0x29d   : > { %1227 = vmax.xlane.f32.xlu2 %v1207_v63  ;;  %1237 = vmax.xlane.f32.xlu1 %v1212_v9 }
 0x29e   : > { %1241 = vmax.xlane.f32.xlu0 %v1214_v6 }
 0x2a5   : > { %1233 = vmax.xlane.f32.xlu2 %v1210_v0  ;;  %1243 = vmax.xlane.f32.xlu1 %v1215_v4 }
 0x2a6   : > { %1247 = vmax.xlane.f32.xlu0 %v1217_v24 }
 0x2ad   : > { %1239 = vmax.xlane.f32.xlu2 %v1213_v39  ;;  %1249 = vmax.xlane.f32.xlu1 %v1218_v8 }
 0x2b5   : > { %1245 = vmax.xlane.f32.xlu2 %v1216_v1 }
 0x2f0   : > { %v1220_v38 = vpop.xlane.xlu2 %1219 }
 0x2f1   : > { %v1268_v19 = vperm.slane %v1220_v38, 0  ;;  %v1269_v46 = vperm.slane %v1220_v38, 1  ;;  %v1270_v29 = vperm.slane %v1220_v38, 2  ;;  %v1271_v18 = vperm.slane %v1220_v38, 3 }
 0x2f2   : > { %v1272_v45 = vperm.slane %v1220_v38, 4  ;;  %v1273_v20 = vperm.slane %v1220_v38, 5  ;;  %v1274_v55 = vperm.slane %v1220_v38, 6  ;;  %v1275_v11 = vperm.slane %v1220_v38, 7 }
 0x2f3   : > { %1396 = vst [vmem:[#allocation1] ss:$9 sm:$0xff] %v1268_v19 }
 0x2f4   : > { %1398 = vst [vmem:[#allocation1 + $0x1] ss:$9 sm:$0xff] %v1269_v46 }
 0x2f5   : > { %1400 = vst [vmem:[#allocation1 + $0x2] ss:$9 sm:$0xff] %v1270_v29 }
 0x2f6   : > { %1402 = vst [vmem:[#allocation1 + $0x3] ss:$9 sm:$0xff] %v1271_v18 }
 0x2f7   : > { %1404 = vst [vmem:[#allocation1 + $0x4] ss:$9 sm:$0xff] %v1272_v45 }
 0x2f8   : > { %1406 = vst [vmem:[#allocation1 + $0x5] ss:$9 sm:$0xff] %v1273_v20  ;;  %v1222_v30 = vpop.xlane.xlu0 %1221 }
 0x2f9   : > { %1408 = vst [vmem:[#allocation1 + $0x6] ss:$9 sm:$0xff] %v1274_v55  ;;  %v1276_v57 = vperm.slane %v1222_v30, 0  ;;  %v1277_v3 = vperm.slane %v1222_v30, 1  ;;  %v1278_v10 = vperm.slane %v1222_v30, 2  ;;  %v1279_v37 = vperm.slane %v1222_v30, 3 }
 0x2fa   : > { %1410 = vst [vmem:[#allocation1 + $0x7] ss:$9 sm:$0xff] %v1275_v11  ;;  %v1280_v5 = vperm.slane %v1222_v30, 4  ;;  %v1281_v31 = vperm.slane %v1222_v30, 5  ;;  %v1282_v32 = vperm.slane %v1222_v30, 6  ;;  %v1283_v40 = vperm.slane %v1222_v30, 7 }
 0x300   : > { %v1224_v62 = vpop.xlane.xlu1 %1223  ;;  %v1230_v53 = vpop.xlane.xlu0 %1229 }
 0x301   : > { %v1411_v41 = vld [vmem:[#allocation1] sm:$0xff]  ;;  %v1284_v43 = vperm.slane %v1224_v62, 0  ;;  %v1285_v33 = vperm.slane %v1224_v62, 1  ;;  %v1286_v14 = vperm.slane %v1224_v62, 2  ;;  %v1287_v47 = vperm.slane %v1224_v62, 3 }
 0x302   : > { %1412 = vst [vmem:[#allocation1] ss:$9 sm:$0xff] %v1276_v57  ;;  %1548 = vperm.xlu2 %1922, %v1411_v41   ;;  %v1288_v44 = vperm.slane %v1224_v62, 4  ;;  %v1289_v58 = vperm.slane %v1224_v62, 5  ;;  %v1290_v49 = vperm.slane %v1224_v62, 6  ;;  %v1291_v42 = vperm.slane %v1224_v62, 7 }
 0x303   : > { %1413 = vst [vmem:[#allocation1 + $0x1] ss:$9 sm:$0xff] %v1277_v3  ;;  %v1308_v63 = vperm.slane %v1230_v53, 0  ;;  %v1309_v9 = vperm.slane %v1230_v53, 1  ;;  %v1310_v2 = vperm.slane %v1230_v53, 2  ;;  %v1311_v6 = vperm.slane %v1230_v53, 3 }
 0x304   : > { %1414 = vst [vmem:[#allocation1 + $0x2] ss:$9 sm:$0xff] %v1278_v10  ;;  %v1312_v54 = vperm.slane %v1230_v53, 4  ;;  %v1313_v0 = vperm.slane %v1230_v53, 5  ;;  %v1314_v4 = vperm.slane %v1230_v53, 6  ;;  %v1315_v24 = vperm.slane %v1230_v53, 7 }
 0x305   : > { %1415 = vst [vmem:[#allocation1 + $0x3] ss:$9 sm:$0xff] %v1279_v37 }
 0x306   : > { %1416 = vst [vmem:[#allocation1 + $0x4] ss:$9 sm:$0xff] %v1280_v5 }
 0x307   : > { %1417 = vst [vmem:[#allocation1 + $0x5] ss:$9 sm:$0xff] %v1281_v31 }
 0x308   : > { %1418 = vst [vmem:[#allocation1 + $0x6] ss:$9 sm:$0xff] %v1282_v32  ;;  %v1226_v15 = vpop.xlane.xlu2 %1225  ;;  %v1232_v21 = vpop.xlane.xlu1 %1231 }
 0x309   : > { %1419 = vst [vmem:[#allocation1 + $0x7] ss:$9 sm:$0xff] %v1283_v40  ;;  %v1292_v17 = vperm.slane %v1226_v15, 0  ;;  %v1293_v13 = vperm.slane %v1226_v15, 1  ;;  %v1294_v59 = vperm.slane %v1226_v15, 2  ;;  %v1295_v27 = vperm.slane %v1226_v15, 3  ;;  %v1236_v31 = vpop.xlane.xlu0 %1235 }
 0x30a   : > { %v1296_v7 = vperm.slane %v1226_v15, 4  ;;  %v1297_v28 = vperm.slane %v1226_v15, 5  ;;  %v1298_v34 = vperm.slane %v1226_v15, 6  ;;  %v1299_v36 = vperm.slane %v1226_v15, 7 }
 0x30b   : > { %v1316_v39 = vperm.slane %v1232_v21, 0  ;;  %v1317_v8 = vperm.slane %v1232_v21, 1  ;;  %v1318_v1 = vperm.slane %v1232_v21, 2  ;;  %v1319_v19 = vperm.slane %v1232_v21, 3 }
 0x30c   : > { %v1320_v46 = vperm.slane %v1232_v21, 4  ;;  %v1321_v29 = vperm.slane %v1232_v21, 5  ;;  %v1322_v18 = vperm.slane %v1232_v21, 6  ;;  %v1323_v45 = vperm.slane %v1232_v21, 7 }
 0x30d   : > { %v1332_v32 = vperm.slane %v1236_v31, 0  ;;  %v1333_v40 = vperm.slane %v1236_v31, 1  ;;  %v1334_v62 = vperm.slane %v1236_v31, 2 }
 0x310   : > { %v1420_v25 = vld [vmem:[#allocation1] sm:$0xff]  ;;  %v1228_v23 = vpop.xlane.xlu2 %1227 }
 0x311   : > { %1421 = vst [vmem:[#allocation1] ss:$9 sm:$0xff] %v1284_v43  ;;  %1551 = vperm.xlu0 %1918, %v1420_v25   ;;  %v1300_v26 = vperm.slane %v1228_v23, 0  ;;  %v1301_v51 = vperm.slane %v1228_v23, 1  ;;  %v1302_v52 = vperm.slane %v1228_v23, 2  ;;  %v1303_v60 = vperm.slane %v1228_v23, 3 }
 0x312   : > { %1422 = vst [vmem:[#allocation1 + $0x1] ss:$9 sm:$0xff] %v1285_v33  ;;  %v1304_v35 = vperm.slane %v1228_v23, 4  ;;  %v1305_v22 = vperm.slane %v1228_v23, 5  ;;  %v1306_v50 = vperm.slane %v1228_v23, 6  ;;  %v1307_v56 = vperm.slane %v1228_v23, 7 }
 0x313   : > { %1423 = vst [vmem:[#allocation1 + $0x2] ss:$9 sm:$0xff] %v1286_v14  ;;  %v1335_v33 = vperm.slane %v1236_v31, 3  ;;  %v1336_v14 = vperm.slane %v1236_v31, 4  ;;  %v1337_v25 = vperm.slane %v1236_v31, 5 }
 0x314   : > { %1424 = vst [vmem:[#allocation1 + $0x3] ss:$9 sm:$0xff] %v1287_v47  ;;  %v1338_v47 = vperm.slane %v1236_v31, 6 }
 0x315   : > { %1425 = vst [vmem:[#allocation1 + $0x4] ss:$9 sm:$0xff] %v1288_v44  ;;  %v1339_v44 = vperm.slane %v1236_v31, 7 }
 0x316   : > { %1426 = vst [vmem:[#allocation1 + $0x5] ss:$9 sm:$0xff] %v1289_v58  ;;  %v1238_v58 = vpop.xlane.xlu1 %1237 }
 0x317   : > { %1427 = vst [vmem:[#allocation1 + $0x6] ss:$9 sm:$0xff] %v1290_v49  ;;  %v1340_v49 = vperm.slane %v1238_v58, 0  ;;  %v1341_v15 = vperm.slane %v1238_v58, 1 }
 0x318   : > { %1428 = vst [vmem:[#allocation1 + $0x7] ss:$9 sm:$0xff] %v1291_v42  ;;  %v1234_v20 = vpop.xlane.xlu2 %1233 }
 0x319   : > { %v1324_v55 = vperm.slane %v1234_v20, 0  ;;  %v1325_v30 = vperm.slane %v1234_v20, 1  ;;  %v1326_v57 = vperm.slane %v1234_v20, 2  ;;  %v1327_v3 = vperm.slane %v1234_v20, 3 }
 0x31a   : > { %v1328_v10 = vperm.slane %v1234_v20, 4  ;;  %v1329_v41 = vperm.slane %v1234_v20, 5  ;;  %v1330_v37 = vperm.slane %v1234_v20, 6  ;;  %v1331_v5 = vperm.slane %v1234_v20, 7 }
 0x31f   : > { %v1429_v48 = vld [vmem:[#allocation1] sm:$0xff] }
 0x320   : > { %1430 = vst [vmem:[#allocation1] ss:$9 sm:$0xff] %v1292_v17  ;;  %1554 = vperm.xlu1 %1921, %v1429_v48   ;;  %v1342_v17 = vperm.slane %v1238_v58, 2  ;;  %v1345_v48 = vperm.slane %v1238_v58, 5 }
 0x321   : > { %1431 = vst [vmem:[#allocation1 + $0x1] ss:$9 sm:$0xff] %v1293_v13  ;;  %v1343_v13 = vperm.slane %v1238_v58, 3 }
 0x322   : > { %1432 = vst [vmem:[#allocation1 + $0x2] ss:$9 sm:$0xff] %v1294_v59  ;;  %v1344_v59 = vperm.slane %v1238_v58, 4 }
 0x323   : > { %1433 = vst [vmem:[#allocation1 + $0x3] ss:$9 sm:$0xff] %v1295_v27  ;;  %v1346_v27 = vperm.slane %v1238_v58, 6 }
 0x324   : > { %1434 = vst [vmem:[#allocation1 + $0x4] ss:$9 sm:$0xff] %v1296_v7  ;;  %v1347_v7 = vperm.slane %v1238_v58, 7 }
 0x325   : > { %1435 = vst [vmem:[#allocation1 + $0x5] ss:$9 sm:$0xff] %v1297_v28  ;;  %v1240_v28 = vpop.xlane.xlu2 %1239 }
 0x326   : > { %1436 = vst [vmem:[#allocation1 + $0x6] ss:$9 sm:$0xff] %v1298_v34  ;;  %v1348_v34 = vperm.slane %v1240_v28, 0  ;;  %v1350_v23 = vperm.slane %v1240_v28, 2 }
 0x327   : > { %1437 = vst [vmem:[#allocation1 + $0x7] ss:$9 sm:$0xff] %v1299_v36  ;;  %v1349_v36 = vperm.slane %v1240_v28, 1 }
 0x32e   : > { %v1438_v16 = vld [vmem:[#allocation1] sm:$0xff] }
 0x32f   : > { %1439 = vst [vmem:[#allocation1] ss:$9 sm:$0xff] %v1300_v26  ;;  %1557 = vperm.xlu0 %1918, %v1438_v16   ;;  %v1353_v16 = vperm.slane %v1240_v28, 5 }
 0x330   : > { %1440 = vst [vmem:[#allocation1 + $0x1] ss:$9 sm:$0xff] %v1301_v51  ;;  %v1351_v51 = vperm.slane %v1240_v28, 3 }
 0x331   : > { %1441 = vst [vmem:[#allocation1 + $0x2] ss:$9 sm:$0xff] %v1302_v52  ;;  %v1352_v52 = vperm.slane %v1240_v28, 4 }
 0x332   : > { %1442 = vst [vmem:[#allocation1 + $0x3] ss:$9 sm:$0xff] %v1303_v60  ;;  %v1354_v60 = vperm.slane %v1240_v28, 6 }
 0x333   : > { %1443 = vst [vmem:[#allocation1 + $0x4] ss:$9 sm:$0xff] %v1304_v35  ;;  %v1355_v35 = vperm.slane %v1240_v28, 7 }
 0x334   : > { %1444 = vst [vmem:[#allocation1 + $0x5] ss:$9 sm:$0xff] %v1305_v22  ;;  %v1242_v22 = vpop.xlane.xlu0 %1241 }
 0x335   : > { %1445 = vst [vmem:[#allocation1 + $0x6] ss:$9 sm:$0xff] %v1306_v50  ;;  %v1356_v50 = vperm.slane %v1242_v22, 0 }
 0x336   : > { %1446 = vst [vmem:[#allocation1 + $0x7] ss:$9 sm:$0xff] %v1307_v56  ;;  %v1357_v56 = vperm.slane %v1242_v22, 1 }
 0x33d   : > { %v1447_v61 = vld [vmem:[#allocation1] sm:$0xff] }
 0x33e   : > { %1448 = vst [vmem:[#allocation1] ss:$9 sm:$0xff] %v1308_v63  ;;  %1560 = vperm.xlu2 %1922, %v1447_v61   ;;  %v1358_v63 = vperm.slane %v1242_v22, 2  ;;  %v1360_v61 = vperm.slane %v1242_v22, 4 }
 0x33f   : > { %1449 = vst [vmem:[#allocation1 + $0x1] ss:$9 sm:$0xff] %v1309_v9  ;;  %v1359_v9 = vperm.slane %v1242_v22, 3 }
 0x340   : > { %1450 = vst [vmem:[#allocation1 + $0x2] ss:$9 sm:$0xff] %v1310_v2  ;;  %v1361_v2 = vperm.slane %v1242_v22, 5 }
 0x341   : > { %1451 = vst [vmem:[#allocation1 + $0x3] ss:$9 sm:$0xff] %v1311_v6  ;;  %v1362_v6 = vperm.slane %v1242_v22, 6 }
 0x342   : > { %1452 = vst [vmem:[#allocation1 + $0x4] ss:$9 sm:$0xff] %v1312_v54  ;;  %v1363_v54 = vperm.slane %v1242_v22, 7 }
 0x343   : > { %1453 = vst [vmem:[#allocation1 + $0x5] ss:$9 sm:$0xff] %v1313_v0  ;;  %v1244_v0 = vpop.xlane.xlu1 %1243 }
 0x344   : > { %1454 = vst [vmem:[#allocation1 + $0x6] ss:$9 sm:$0xff] %v1314_v4  ;;  %v1364_v4 = vperm.slane %v1244_v0, 0  ;;  %v1366_v21 = vperm.slane %v1244_v0, 2 }
 0x345   : > { %1455 = vst [vmem:[#allocation1 + $0x7] ss:$9 sm:$0xff] %v1315_v24  ;;  %v1365_v24 = vperm.slane %v1244_v0, 1 }
 0x34c   : > { %v1456_v38 = vld [vmem:[#allocation1] sm:$0xff] }
 0x34d   : > { %1457 = vst [vmem:[#allocation1] ss:$9 sm:$0xff] %v1316_v39  ;;  %1563 = vperm.xlu1 %1921, %v1456_v38   ;;  %v1369_v38 = vperm.slane %v1244_v0, 5 }
 0x34e   : > { %1458 = vst [vmem:[#allocation1 + $0x1] ss:$9 sm:$0xff] %v1317_v8  ;;  %v1367_v8 = vperm.slane %v1244_v0, 3 }
 0x34f   : > { %1459 = vst [vmem:[#allocation1 + $0x2] ss:$9 sm:$0xff] %v1318_v1  ;;  %v1368_v1 = vperm.slane %v1244_v0, 4 }
 0x350   : > { %1460 = vst [vmem:[#allocation1 + $0x3] ss:$9 sm:$0xff] %v1319_v19  ;;  %v1370_v19 = vperm.slane %v1244_v0, 6 }
 0x351   : > { %1461 = vst [vmem:[#allocation1 + $0x4] ss:$9 sm:$0xff] %v1320_v46  ;;  %v1371_v46 = vperm.slane %v1244_v0, 7 }
 0x352   : > { %1462 = vst [vmem:[#allocation1 + $0x5] ss:$9 sm:$0xff] %v1321_v29  ;;  %v1246_v29 = vpop.xlane.xlu2 %1245 }
 0x353   : > { %1463 = vst [vmem:[#allocation1 + $0x6] ss:$9 sm:$0xff] %v1322_v18  ;;  %v1372_v18 = vperm.slane %v1246_v29, 0 }
 0x354   : > { %1464 = vst [vmem:[#allocation1 + $0x7] ss:$9 sm:$0xff] %v1323_v45  ;;  %v1373_v45 = vperm.slane %v1246_v29, 1 }
 0x35b   : > { %v1465_v11 = vld [vmem:[#allocation1] sm:$0xff] }
 0x35c   : > { %1466 = vst [vmem:[#allocation1] ss:$9 sm:$0xff] %v1324_v55  ;;  %1566 = vperm.xlu0 %1918, %v1465_v11   ;;  %v1374_v55 = vperm.slane %v1246_v29, 2  ;;  %v1375_v11 = vperm.slane %v1246_v29, 3  ;;  %v1549_v28 = vpop.permute.xlu2 %1548 }
 0x35d   : > { %1467 = vst [vmem:[#allocation1 + $0x1] ss:$9 sm:$0xff] %v1325_v30  ;;  %v1376_v30 = vperm.slane %v1246_v29, 4 }
 0x35e   : > { %1468 = vst [vmem:[#allocation1 + $0x2] ss:$9 sm:$0xff] %v1326_v57  ;;  %v1377_v57 = vperm.slane %v1246_v29, 5 }
 0x35f   : > { %1469 = vst [vmem:[#allocation1 + $0x3] ss:$9 sm:$0xff] %v1327_v3  ;;  %v1378_v3 = vperm.slane %v1246_v29, 6 }
 0x360   : > { %1470 = vst [vmem:[#allocation1 + $0x4] ss:$9 sm:$0xff] %v1328_v10  ;;  %v1379_v10 = vperm.slane %v1246_v29, 7 }
 0x361   : > { %1471 = vst [vmem:[#allocation1 + $0x5] ss:$9 sm:$0xff] %v1329_v41  ;;  %v1248_v41 = vpop.xlane.xlu0 %1247 }
 0x362   : > { %1472 = vst [vmem:[#allocation1 + $0x6] ss:$9 sm:$0xff] %v1330_v37  ;;  %v1380_v37 = vperm.slane %v1248_v41, 0  ;;  %v1382_v31 = vperm.slane %v1248_v41, 2 }
 0x363   : > { %1473 = vst [vmem:[#allocation1 + $0x7] ss:$9 sm:$0xff] %v1331_v5  ;;  %v1381_v5 = vperm.slane %v1248_v41, 1 }
 0x36a   : > { %v1474_v43 = vld [vmem:[#allocation1] sm:$0xff] }
 0x36b   : > { %1475 = vst [vmem:[#allocation1] ss:$9 sm:$0xff] %v1332_v32  ;;  %1569 = vperm.xlu2 %1922, %v1474_v43   ;;  %v1383_v32 = vperm.slane %v1248_v41, 3  ;;  %v1385_v43 = vperm.slane %v1248_v41, 5 }
 0x36c   : > { %1476 = vst [vmem:[#allocation1 + $0x1] ss:$9 sm:$0xff] %v1333_v40 }
 0x36d   : > { %1477 = vst [vmem:[#allocation1 + $0x2] ss:$9 sm:$0xff] %v1334_v62  ;;  %v1384_v62 = vperm.slane %v1248_v41, 4 }
 0x36e   : > { %1478 = vst [vmem:[#allocation1 + $0x3] ss:$9 sm:$0xff] %v1335_v33  ;;  %v1386_v33 = vperm.slane %v1248_v41, 6 }
 0x36f   : > { %1479 = vst [vmem:[#allocation1 + $0x4] ss:$9 sm:$0xff] %v1336_v14  ;;  %v1387_v14 = vperm.slane %v1248_v41, 7 }
 0x370   : > { %1480 = vst [vmem:[#allocation1 + $0x5] ss:$9 sm:$0xff] %v1337_v25  ;;  %v1250_v25 = vpop.xlane.xlu1 %1249 }
 0x371   : > { %1481 = vst [vmem:[#allocation1 + $0x6] ss:$9 sm:$0xff] %v1338_v47  ;;  %v1388_v47 = vperm.slane %v1250_v25, 0 }
 0x372   : > { %1482 = vst [vmem:[#allocation1 + $0x7] ss:$9 sm:$0xff] %v1339_v44  ;;  %v1389_v44 = vperm.slane %v1250_v25, 1 }
 0x379   : > { %v1483_v42 = vld [vmem:[#allocation1] sm:$0xff] }
 0x37a   : > { %1484 = vst [vmem:[#allocation1] ss:$9 sm:$0xff] %v1340_v49  ;;  %1572 = vperm.xlu1 %1921, %v1483_v42   ;;  %v1390_v49 = vperm.slane %v1250_v25, 2  ;;  %v1391_v42 = vperm.slane %v1250_v25, 3 }
 0x37b   : > { %1485 = vst [vmem:[#allocation1 + $0x1] ss:$9 sm:$0xff] %v1341_v15  ;;  %v1392_v15 = vperm.slane %v1250_v25, 4 }
 0x37c   : > { %1486 = vst [vmem:[#allocation1 + $0x2] ss:$9 sm:$0xff] %v1342_v17  ;;  %v1393_v17 = vperm.slane %v1250_v25, 5 }
 0x37d   : > { %1487 = vst [vmem:[#allocation1 + $0x3] ss:$9 sm:$0xff] %v1343_v13  ;;  %v1394_v13 = vperm.slane %v1250_v25, 6 }
 0x37e   : > { %1488 = vst [vmem:[#allocation1 + $0x4] ss:$9 sm:$0xff] %v1344_v59  ;;  %v1395_v59 = vperm.slane %v1250_v25, 7 }
 0x37f   : > { %1489 = vst [vmem:[#allocation1 + $0x5] ss:$9 sm:$0xff] %v1345_v48 }
 0x380   : > { %1490 = vst [vmem:[#allocation1 + $0x6] ss:$9 sm:$0xff] %v1346_v27 }
 0x381   : > { %1491 = vst [vmem:[#allocation1 + $0x7] ss:$9 sm:$0xff] %v1347_v7 }
 0x383   : > { %v1552_v27 = vpop.permute.xlu0 %1551 }
 0x388   : > { %v1492_v26 = vld [vmem:[#allocation1] sm:$0xff] }
 0x389   : > { %1493 = vst [vmem:[#allocation1] ss:$9 sm:$0xff] %v1348_v34  ;;  %1575 = vperm.xlu0 %1918, %v1492_v26   ;;  %v2041_v34 = vmov -inf  }
 0x38a   : > { %1494 = vst [vmem:[#allocation1 + $0x1] ss:$9 sm:$0xff] %v1349_v36 }
 0x38b   : > { %1495 = vst [vmem:[#allocation1 + $0x2] ss:$9 sm:$0xff] %v1350_v23 }
 0x38c   : > { %1496 = vst [vmem:[#allocation1 + $0x3] ss:$9 sm:$0xff] %v1351_v51  ;;  %v1596_v51 = vadd.s32 4294967288, %v2744_v12 }
 0x38d   : > { %1497 = vst [vmem:[#allocation1 + $0x4] ss:$9 sm:$0xff] %v1352_v52  ;;  %v1600_v52 = vadd.s32 4294967280, %v2744_v12 }
 0x38e   : > { %1498 = vst [vmem:[#allocation1 + $0x5] ss:$9 sm:$0xff] %v1353_v16  ;;  %v1604_v16 = vadd.s32 4294967272, %v2744_v12 }
 0x38f   : > { %1499 = vst [vmem:[#allocation1 + $0x6] ss:$9 sm:$0xff] %v1354_v60 }
 0x390   : > { %1500 = vst [vmem:[#allocation1 + $0x7] ss:$9 sm:$0xff] %v1355_v35  ;;  %v1597_v35 = vperm.slane %v1552_v27, %v1596_v51 }
 0x391   : > { %219 = vst [vmem:[%s2782_s9] sm:$0x1] %v2041_v34 }
 0x392   : > { %v1555_v7 = vpop.permute.xlu1 %1554 }
 0x393   : > { %v1601_v22 = vperm.slane %v1555_v7, %v1600_v52 }
 0x397   : > { %v1501_v53 = vld [vmem:[#allocation1] sm:$0xff] }
 0x398   : > { %1502 = vst [vmem:[#allocation1] ss:$9 sm:$0xff] %v1356_v50  ;;  %1578 = vperm.xlu2 %1922, %v1501_v53   ;;  %v1561_v26 = vpop.permute.xlu2 %1560  ;;  %v1595_v50 = vperm.slane %v1549_v28, %v2744_v12  ;;  %v1612_v53 = vadd.s32 4294967256, %v2744_v12 }
 0x399   : > { %1503 = vst [vmem:[#allocation1 + $0x1] ss:$9 sm:$0xff] %v1357_v56 }
 0x39a   : > { %1504 = vst [vmem:[#allocation1 + $0x2] ss:$9 sm:$0xff] %v1358_v63 }
 0x39b   : > { %1505 = vst [vmem:[#allocation1 + $0x3] ss:$9 sm:$0xff] %v1359_v9  ;;  %v1608_v9 = vadd.s32 4294967264, %v2744_v12 }
 0x39c   : > { %1506 = vst [vmem:[#allocation1 + $0x4] ss:$9 sm:$0xff] %v1360_v61 }
 0x39d   : > { %1507 = vst [vmem:[#allocation1 + $0x5] ss:$9 sm:$0xff] %v1361_v2  ;;  %v1616_v2 = vadd.s32 4294967248, %v2744_v12 }
 0x39e   : > { %1508 = vst [vmem:[#allocation1 + $0x6] ss:$9 sm:$0xff] %v1362_v6  ;;  %v1599_v6 = vsel %vm1598_vm1, %v1597_v35, %v1595_v50 }
 0x39f   : > { %1509 = vst [vmem:[#allocation1 + $0x7] ss:$9 sm:$0xff] %v1363_v54  ;;  %v1603_v54 = vsel %vm1602_vm2, %v1601_v22, %v1599_v6 }
 0x3a1   : > { %v1558_v36 = vpop.permute.xlu0 %1557 }
 0x3a2   : > { %v1605_v56 = vperm.slane %v1558_v36, %v1604_v16 }
 0x3a4   : > { %v1607_v0 = vsel %vm1606_vm3, %v1605_v56, %v1603_v54 }
 0x3a6   : > { %v1510_v39 = vld [vmem:[#allocation1] sm:$0xff] }
 0x3a7   : > { %1511 = vst [vmem:[#allocation1] ss:$9 sm:$0xff] %v1364_v4  ;;  %1581 = vperm.xlu1 %1921, %v1510_v39  }
 0x3a8   : > { %1512 = vst [vmem:[#allocation1 + $0x1] ss:$9 sm:$0xff] %v1365_v24 }
 0x3a9   : > { %1513 = vst [vmem:[#allocation1 + $0x2] ss:$9 sm:$0xff] %v1366_v21  ;;  %v1609_v21 = vperm.slane %v1561_v26, %v1608_v9 }
 0x3aa   : > { %1514 = vst [vmem:[#allocation1 + $0x3] ss:$9 sm:$0xff] %v1367_v8  ;;  %v1624_v8 = vadd.s32 4294967232, %v2744_v12 }
 0x3ab   : > { %1515 = vst [vmem:[#allocation1 + $0x4] ss:$9 sm:$0xff] %v1368_v1  ;;  %v1620_v1 = vadd.s32 4294967240, %v2744_v12 }
 0x3ac   : > { %1516 = vst [vmem:[#allocation1 + $0x5] ss:$9 sm:$0xff] %v1369_v38  ;;  %v1628_v38 = vadd.s32 4294967224, %v2744_v12 }
 0x3ad   : > { %1517 = vst [vmem:[#allocation1 + $0x6] ss:$9 sm:$0xff] %v1370_v19  ;;  %v1611_v19 = vsel %vm1610_vm4, %v1609_v21, %v1607_v0 }
 0x3ae   : > { %1518 = vst [vmem:[#allocation1 + $0x7] ss:$9 sm:$0xff] %v1371_v46 }
 0x3b5   : > { %v1519_v20 = vld [vmem:[#allocation1] sm:$0xff] }
 0x3b6   : > { %1520 = vst [vmem:[#allocation1] ss:$9 sm:$0xff] %v1372_v18  ;;  %1584 = vperm.xlu0 %1918, %v1519_v20  }
 0x3b7   : > { %1521 = vst [vmem:[#allocation1 + $0x1] ss:$9 sm:$0xff] %v1373_v45 }
 0x3b8   : > { %1522 = vst [vmem:[#allocation1 + $0x2] ss:$9 sm:$0xff] %v1374_v55 }
 0x3b9   : > { %1523 = vst [vmem:[#allocation1 + $0x3] ss:$9 sm:$0xff] %v1375_v11 }
 0x3ba   : > { %1524 = vst [vmem:[#allocation1 + $0x4] ss:$9 sm:$0xff] %v1376_v30  ;;  %v1636_v30 = vadd.s32 4294967208, %v2744_v12 }
 0x3bb   : > { %1525 = vst [vmem:[#allocation1 + $0x5] ss:$9 sm:$0xff] %v1377_v57  ;;  %v1632_v57 = vadd.s32 4294967216, %v2744_v12 }
 0x3bc   : > { %1526 = vst [vmem:[#allocation1 + $0x6] ss:$9 sm:$0xff] %v1378_v3  ;;  %v1640_v3 = vadd.s32 4294967200, %v2744_v12 }
 0x3bd   : > { %1527 = vst [vmem:[#allocation1 + $0x7] ss:$9 sm:$0xff] %v1379_v10 }
 0x3bf   : > { %v1564_v23 = vpop.permute.xlu1 %1563 }
 0x3c0   : > { %v1613_v4 = vperm.slane %v1564_v23, %v1612_v53 }
 0x3c2   : > { %v1615_v46 = vsel %vm1614_vm5, %v1613_v4, %v1611_v19 }
 0x3c4   : > { %v1528_v40 = vld [vmem:[#allocation1] sm:$0xff] }
 0x3c5   : > { %1587 = vperm.xlu2 %1922, %v1528_v40   ;;  %1529 = vst [vmem:[#allocation1] ss:$9 sm:$0xff] %v1380_v37  ;;  %v1570_v61 = vpop.permute.xlu2 %1569 }
 0x3c6   : > { %1530 = vst [vmem:[#allocation1 + $0x1] ss:$9 sm:$0xff] %v1381_v5  ;;  %v1621_v55 = vperm.slane %v1570_v61, %v1620_v1 }
 0x3c7   : > { %1531 = vst [vmem:[#allocation1 + $0x2] ss:$9 sm:$0xff] %v1382_v31 }
 0x3c8   : > { %1532 = vst [vmem:[#allocation1 + $0x3] ss:$9 sm:$0xff] %v1383_v32 }
 0x3c9   : > { %1533 = vst [vmem:[#allocation1 + $0x4] ss:$9 sm:$0xff] %v1384_v62  ;;  %v1648_v62 = vadd.s32 4294967184, %v2744_v12 }
 0x3ca   : > { %1534 = vst [vmem:[#allocation1 + $0x5] ss:$9 sm:$0xff] %v1385_v43  ;;  %v1644_v43 = vadd.s32 4294967192, %v2744_v12 }
 0x3cb   : > { %1535 = vst [vmem:[#allocation1 + $0x6] ss:$9 sm:$0xff] %v1386_v33 }
 0x3cc   : > { %1536 = vst [vmem:[#allocation1 + $0x7] ss:$9 sm:$0xff] %v1387_v14 }
 0x3ce   : > { %v1567_v60 = vpop.permute.xlu0 %1566 }
 0x3cf   : > { %v1617_v39 = vperm.slane %v1567_v60, %v1616_v2 }
 0x3d1   : > { %v1619_v18 = vsel %vm1618_vm6, %v1617_v39, %v1615_v46 }
 0x3d2   : > { %v1623_v10 = vsel %vm1622_vm7, %v1621_v55, %v1619_v18 }
 0x3d3   : > { %v1537_v58 = vld [vmem:[#allocation1] sm:$0xff] }
 0x3d4   : > { %1590 = vperm.xlu1 %1921, %v1537_v58   ;;  %1538 = vst [vmem:[#allocation1] ss:$9 sm:$0xff] %v1388_v47 }
 0x3d5   : > { %1539 = vst [vmem:[#allocation1 + $0x1] ss:$9 sm:$0xff] %v1389_v44  ;;  %v1652_v44 = vadd.s32 4294967176, %v2744_v12 }
 0x3d6   : > { %1540 = vst [vmem:[#allocation1 + $0x2] ss:$9 sm:$0xff] %v1390_v49 }
 0x3d7   : > { %1541 = vst [vmem:[#allocation1 + $0x3] ss:$9 sm:$0xff] %v1391_v42 }
 0x3d8   : > { %1542 = vst [vmem:[#allocation1 + $0x4] ss:$9 sm:$0xff] %v1392_v15 }
 0x3d9   : > { %1543 = vst [vmem:[#allocation1 + $0x5] ss:$9 sm:$0xff] %v1393_v17 }
 0x3da   : > { %1544 = vst [vmem:[#allocation1 + $0x6] ss:$9 sm:$0xff] %v1394_v13 }
 0x3db   : > { %1545 = vst [vmem:[#allocation1 + $0x7] ss:$9 sm:$0xff] %v1395_v59  ;;  %v1251_v59 = vld [vmem:[%s2782_s9] sm:$0x1] }
 0x3e2   : > { %v1546_v48 = vld [vmem:[#allocation1] sm:$0xff] }
 0x3e3   : > { %1593 = vperm.xlu0 %1918, %v1546_v48  }
 0x3ec   : > { %v1573_v63 = vpop.permute.xlu1 %1572 }
 0x3ed   : > { %v1625_v20 = vperm.slane %v1573_v63, %v1624_v8 }
 0x3ef   : > { %v1627_v37 = vsel %vm1626_vm8, %v1625_v20, %v1623_v10 }
 0x3f2   : > { %v1579_v45 = vpop.permute.xlu2 %1578 }
 0x3f3   : > { %v1633_v32 = vperm.slane %v1579_v45, %v1632_v57 }
 0x3fb   : > { %v1576_v24 = vpop.permute.xlu0 %1575 }
 0x3fc   : > { %v1629_v11 = vperm.slane %v1576_v24, %v1628_v38 }
 0x3fe   : > { %v1631_v5 = vsel %vm1630_vm9, %v1629_v11, %v1627_v37 }
 0x3ff   : > { %v1635_v25 = vsel %vm1634_vm10, %v1633_v32, %v1631_v5 }
 0x419   : > { %v1582_v29 = vpop.permute.xlu1 %1581 }
 0x41a   : > { %v1637_v31 = vperm.slane %v1582_v29, %v1636_v30 }
 0x41c   : > { %v1639_v47 = vsel %vm1638_vm11, %v1637_v31, %v1635_v25 }
 0x41f   : > { %v1588_v14 = vpop.permute.xlu2 %1587 }
 0x420   : > { %v1645_v42 = vperm.slane %v1588_v14, %v1644_v43 }
 0x428   : > { %v1585_v41 = vpop.permute.xlu0 %1584 }
 0x429   : > { %v1641_v40 = vperm.slane %v1585_v41, %v1640_v3 }
 0x42b   : > { %v1643_v58 = vsel %vm1642_vm12, %v1641_v40, %v1639_v47 }
 0x42c   : > { %v1647_v17 = vsel %vm1646_vm13, %v1645_v42, %v1643_v58 }
 0x446   : > { %v1591_v33 = vpop.permute.xlu1 %1590 }
 0x447   : > { %v1649_v49 = vperm.slane %v1591_v33, %v1648_v62 }
 0x449   : > { %v1651_v12 = vsel %vm1650_vm14, %v1649_v49, %v1647_v17 }
 0x455   : > { %v1594_v15 = vpop.permute.xlu0 %1593 }
 0x456   : > { %v1653_v13 = vperm.slane %v1594_v15, %v1652_v44 }
 0x458   : > { %v1655_v48 = vsel %vm1654_vm15, %v1653_v13, %v1651_v12 }
 0x459   : > { %v1657_v27 = vmax.f32 %v1251_v59, %v1655_v48 }
 0x45b   : > { %1658 = vst [vmem:[%s2782_s9] sm:$0x1] %v1657_v27 }
 0x45c   : > { %1982 = shalt.err (!%p1979_p5)
}
 0x45d   : > { %1810 = dma.vmem_to_hbm [thread:$0]  (%p2107_p4), %s1671_s13, 16, %s1673_s14, %s1660_s21  }
 0x45e PF: > { %p1816_p6 = scmp.ge.s32.totalorder %s2033_s20, 2  ;;  %s1684_s6 = sand.u32 1, %s2013_s15  }
 0x45f   : > { %s1685_s7 = scalar_lea.sflag [#allocation3], %s1684_s6 }
 0x460   : > { %p1813_p7 = pnand %p1816_p6, %p2114_p8 }
 0x462   : > { %p1814_p9 = pneg %p1813_p7 }
 0x464   : > { %2008 = dma.done.wait (%p1814_p9), %s1685_s7, 16  }
 0x465   : > { %2010 = vsyncadd (%p1814_p9), %s1685_s7, 4294967280  ;;  %s17_s20 = sadd.s32 1, %s2033_s20   ;;  %s2849_s15 = smov %s2017_s16 }
 0x466   : > { %p14_p10 = scmp.ge.s32.totalorder %s17_s20, 4   ;;  %s2850_s16 = smov %s2021_s17 }
 0x467   : > { %s2851_s17 = smov %s2120_s28  ;;  %s2852_s18 = smov %s2029_s19 }
 0x468   : > { %s2853_s19 = smov %s2855_s23  ;;  %16 = sbr.rel (!%p14_p10) target bundleno = 4 (0x4), region = 82 }
 0x46d   :  { %1690 = vsyncpa [#allocation3], 1 }
 0x46e   :  { %1692 = vsyncpa [#allocation3 + $0x1], 1 }

</bundles_post_ra>
